<compile_context>
chip_gen: v5e
topology: v5e:2x2
jax: 0.10.0
libtpu: 0.0.40
codegen_flags: <defaults>
</compile_context>

<pallas_src>
import functools

import jax
import jax.numpy as jnp
from jax.experimental import pallas as pl
from jax.experimental.pallas import tpu as pltpu

# ----- cmd_args equivalents -----
LATENT_DIM = 32   # embed_dim
MLP_HIDDEN = 32
MAX_LV = 2
BILIN_Q = True


def _qnet_kernel(BB, N,
                 tgt_ref,                                   # scalar prefetch: (B,) int32 in SMEM
                 feat_ref, w_n2l_ref, b_n2l_ref, adj_ref,   # inputs
                 wc_ref, bc_ref, w1h_ref, w1g_ref, b1_ref,
                 wo_t_ref, bo_ref,
                 out_ref,                                   # output block: (1, BB, N)
                 h_all, pooled, t_scr):                     # VMEM scratch
    blk = pl.program_id(0)
    D = w_n2l_ref.shape[1]
    H = w1h_ref.shape[1]

    # ---- shared across every graph in this block (computed once) ----
    # input_node_linear = node_features @ w_n2l + bias_n2l
    h0 = jnp.dot(feat_ref[...], w_n2l_ref[...],
                 preferred_element_type=jnp.float32) + b_n2l_ref[...]      # (N, D)
    # picked_nodes is None and bilin_q=True -> no bias_picked / bias_target add.
    msg = h0 + bc_ref[...]                     # input_message + conv bias (same every level/graph)
    h_init = jnp.maximum(h0, 0.0)              # F.relu(input_message), shared level-0 state
    wc = wc_ref[...]                           # (D, D)

    def graph_loop(body):
        # Static unroll for small BB (best codegen); pl.loop keeps code size and
        # vreg pressure bounded when BB is large.
        if BB <= 8:
            for g in range(BB):
                body(g)
        else:
            pl.loop(0, BB)(body)

    # ---- message passing: h = relu(conv_params(adj @ h) + input_message), MAX_LV times ----
    def pool_level(get_h):
        def body(g):
            off = g * N
            if not isinstance(off, int):
                off = pl.multiple_of(off, N)
            pooled[pl.ds(off, N), :] = jnp.dot(
                adj_ref[g], get_h(off), preferred_element_type=jnp.float32)   # (N, D)
        graph_loop(body)

    for lv in range(MAX_LV):
        if lv == 0:
            pool_level(lambda off: h_init)                     # level 0 input is shared
        else:
            pool_level(lambda off: h_all[pl.ds(off, N), :])
        # ONE (BB*N, D) @ (D, D) conv matmul + one batched relu/add per level.
        lin = jnp.dot(pooled[...], wc, preferred_element_type=jnp.float32)
        h3 = jnp.maximum(lin.reshape(BB, N, D) + msg[None], 0.0)
        h_all[...] = h3.reshape(BB * N, D)

    # ---- gather target rows directly from the resident state: T[g] = h_g[target_g] ----
    for g in range(BB):                                        # BB tiny row copies
        tgt = jnp.clip(tgt_ref[blk * BB + g], 0, N - 1)        # bounds-safe for valid inputs
        t_scr[pl.ds(g, 1), :] = h_all[pl.ds(g * N + tgt, 1), :]
    T = t_scr[...]                                             # (BB, D)

    # ---- graph embed: region is None -> mean over all nodes of each graph ----
    h3 = h_all[...].reshape(BB, N, D)
    GE = jnp.mean(h3, axis=1)                                  # (BB, D)

    # ---- linear_1 on cat([node_embed, graph_embed]) as split (batched) matmuls ----
    hn = jnp.dot(h_all[...], w1h_ref[...],
                 preferred_element_type=jnp.float32)           # (BB*N, H)
    GE1 = jnp.dot(GE, w1g_ref[...],
                  preferred_element_type=jnp.float32) + b1_ref[...]   # (BB, H)
    hid3 = jnp.maximum(hn.reshape(BB, N, H) + GE1[:, None, :], 0.0)   # (BB, N, H)

    # ---- folded bilinear head, batched over graphs ----
    #   pred = (hid @ wo + bo) @ t  =  hid @ (wo @ t) + bo . t
    VT = jnp.dot(T, wo_t_ref[...], preferred_element_type=jnp.float32)    # (BB, H), row g = (wo@t_g)^T
    C = jnp.sum(T * bo_ref[...], axis=1, keepdims=True)                   # (BB, 1)
    pred = jnp.sum(hid3 * VT[:, None, :], axis=-1) + C                    # (BB, N)

    out_ref[0] = pred.astype(out_ref.dtype)                    # single store per grid step


def _pick_graphs_per_block(B, cap=32):
    """Largest divisor of B <= cap; keep >=2 grid steps when B >= 4 (v7x 2 TCs)."""
    best = 1
    for d in range(1, B + 1):
        if B % d != 0 or d > cap:
            continue
        if B >= 4 and (B // d) < 2:
            continue
        best = d
    return best


def qnet_forward(target_nodes, node_features, adj, params, graphs_per_block=None):
    """Returns q-values of shape (B, N, 1): one (N, 1) prediction per graph."""
    B, N, _ = adj.shape
    F = node_features.shape[1]
    D = LATENT_DIM
    H = MLP_HIDDEN

    BB = _pick_graphs_per_block(B) if graphs_per_block is None else graphs_per_block
    assert B % BB == 0
    steps = B // BB

    f32 = jnp.float32
    feat = node_features.astype(f32)
    adjf = adj.astype(f32)
    w_n2l = params["w_n2l"].astype(f32)
    b_n2l = params["b_n2l"].astype(f32)
    wc = params["wc"].astype(f32)
    bc = params["bc"].astype(f32)
    w1h = params["w1"][:D, :].astype(f32)     # acts on node_embed
    w1g = params["w1"][D:, :].astype(f32)     # acts on graph_embed
    b1 = params["b1"].astype(f32)
    wo_t = params["wo"].T.astype(f32)         # (D, H): head folded as t^T @ wo^T
    bo = params["bo"].astype(f32)
    tgt = target_nodes.astype(jnp.int32)

    kernel = functools.partial(_qnet_kernel, BB, N)

    grid_spec = pltpu.PrefetchScalarGridSpec(
        num_scalar_prefetch=1,
        grid=(steps,),
        in_specs=[
            pl.BlockSpec((N, F), lambda b, t: (0, 0)),          # node_features
            pl.BlockSpec((F, D), lambda b, t: (0, 0)),          # w_n2l
            pl.BlockSpec((1, D), lambda b, t: (0, 0)),          # bias_n2l
            pl.BlockSpec((BB, N, N), lambda b, t: (b, 0, 0)),   # adjacency block
            pl.BlockSpec((D, D), lambda b, t: (0, 0)),          # conv_params weight (in,out)
            pl.BlockSpec((1, D), lambda b, t: (0, 0)),          # conv_params bias
            pl.BlockSpec((D, H), lambda b, t: (0, 0)),          # linear_1 weight (node half)
            pl.BlockSpec((D, H), lambda b, t: (0, 0)),          # linear_1 weight (graph half)
            pl.BlockSpec((1, H), lambda b, t: (0, 0)),          # linear_1 bias
            pl.BlockSpec((D, H), lambda b, t: (0, 0)),          # linear_out weight (out-major)
            pl.BlockSpec((1, D), lambda b, t: (0, 0)),          # linear_out bias
        ],
        out_specs=pl.BlockSpec((1, BB, N), lambda b, t: (b, 0, 0)),
        scratch_shapes=[
            pltpu.VMEM((BB * N, D), jnp.float32),   # H_all: resident message-passing state
            pltpu.VMEM((BB * N, D), jnp.float32),   # pooled (adj @ h) buffer
            pltpu.VMEM((BB, D), jnp.float32),       # gathered target rows
        ],
    )

    flops = int(B * (MAX_LV * (2 * N * N * D + 2 * N * D * D)
                     + 2 * N * D * H + 2 * D * H + 2 * N * H + 2 * D * H)
                + steps * 2 * N * F * D)
    bytes_accessed = int(4 * (B * N * N + B * N + N * F
                              + steps * (F * D + D * D + 3 * D * H + 3 * D + H)))

    out = pl.pallas_call(
        kernel,
        out_shape=jax.ShapeDtypeStruct((steps, BB, N), jnp.float32),
        grid_spec=grid_spec,
        compiler_params=pltpu.CompilerParams(
            dimension_semantics=("parallel",)),     # disjoint output blocks -> v7x 2-TC safe
        cost_estimate=pl.CostEstimate(flops=flops, transcendentals=0,
                                      bytes_accessed=bytes_accessed),
    )(tgt, feat, w_n2l, b_n2l, adjf, wc, bc, w1h, w1g, b1, wo_t, bo)

    # (steps, BB, N) -> (B, N, 1): free wrapper-side plumbing.
    return out.reshape(B, N)[:, :, None]


def qnet_reference(target_nodes, node_features, adj, params):
    """Pure-JAX f32 mirror of the PyTorch forward (picked=None, region=None, actions=None)."""
    hp = jax.lax.Precision.HIGHEST
    dot = lambda a, b: jnp.dot(a, b, precision=hp)
    h0 = dot(node_features, params["w_n2l"]) + params["b_n2l"]
    preds = []
    for i in range(adj.shape[0]):
        input_message = h0
        h = jnp.maximum(h0, 0.0)
        for _ in range(MAX_LV):
            h = jnp.maximum(dot(dot(adj[i], h), params["wc"]) + params["bc"]
                            + input_message, 0.0)
        target_embed = h[target_nodes[i]].reshape(-1, 1)             # (D, 1)
        graph_embed = jnp.mean(h, axis=0, keepdims=True)
        ge = jnp.broadcast_to(graph_embed, h.shape)
        embed_s_a = jnp.concatenate([h, ge], axis=1)                 # (N, 2D)
        hid = jnp.maximum(dot(embed_s_a, params["w1"]) + params["b1"], 0.0)
        raw = dot(hid, params["wo"]) + params["bo"]                  # (N, D)
        preds.append(dot(raw, target_embed))                         # (N, 1)
    return jnp.stack(preds)


def make_params(key, feat_dim):
    D, H = LATENT_DIM, MLP_HIDDEN
    ks = jax.random.split(key, 8)
    scale = 0.1
    return {
        "w_n2l": scale * jax.random.normal(ks[0], (feat_dim, D), jnp.float32),
        "b_n2l": scale * jax.random.normal(ks[1], (1, D), jnp.float32),
        "wc":    scale * jax.random.normal(ks[2], (D, D), jnp.float32),   # conv_params (in,out)
        "bc":    scale * jax.random.normal(ks[3], (1, D), jnp.float32),
        "w1":    scale * jax.random.normal(ks[4], (2 * D, H), jnp.float32),
        "b1":    scale * jax.random.normal(ks[5], (1, H), jnp.float32),
        "wo":    scale * jax.random.normal(ks[6], (H, D), jnp.float32),   # last_wout = D (bilin_q)
        "bo":    scale * jax.random.normal(ks[7], (1, D), jnp.float32),
    }


def _run_case(B, N, F, seed_key):
    k_feat, k_adj, k_par, k_tgt = jax.random.split(seed_key, 4)
    node_features = jax.random.normal(k_feat, (N, F), jnp.float32)

    # Synthetic per-graph adjacency (symmetric + self loops), row-normalized.
    # TODO(synk): GraphNormTool.norm_extra approximated by row normalization here.
    raw = (jax.random.uniform(k_adj, (B, N, N)) < 0.08).astype(jnp.float32)
    sym = jnp.clip(raw + jnp.transpose(raw, (0, 2, 1)), 0.0, 1.0)
    eye = jnp.broadcast_to(jnp.eye(N, dtype=jnp.float32), (B, N, N))
    adjm = sym + eye
    adj = adjm / jnp.sum(adjm, axis=-1, keepdims=True)

    target_nodes = jax.random.randint(k_tgt, (B,), 0, N).astype(jnp.int32)
    params = make_params(k_par, F)

    out = jax.block_until_ready(qnet_forward(target_nodes, node_features, adj, params))
    ref = qnet_reference(target_nodes, node_features, adj, params)
    assert out.shape == (B, N, 1)
    err = float(jnp.max(jnp.abs(out - ref)))
    assert jnp.allclose(out, ref, atol=1e-2, rtol=1e-2), f"mismatch: max abs err {err}"


if __name__ == "__main__":
    key = jax.random.PRNGKey(0)
    k1, k2 = jax.random.split(key)

    # Small case: B=2 -> BB=2, single grid step, statically unrolled graph loop.
    _run_case(B=2, N=64, F=32, seed_key=k1)
    # Larger case: B=32 -> BB=16, 2 parallel grid steps, pl.loop graph loop.
    _run_case(B=32, N=64, F=32, seed_key=k2)

    # TODO(synk): node_greedy_actions (greedy_acts=True) involves per-graph
    # Python region lists; the argmax over list_pred is host-side glue, not kernel work.
    print("KERNEL_OK")
</pallas_src>

<mosaic_0001>
module attributes {stable_mosaic.version = 11 : i64} {
  func.func @_qnet_kernel(%arg0: i32, %arg1: memref<2xi32, #tpu.memory_space<smem>>, %arg2: memref<64x32xf32, #tpu.memory_space<vmem>>, %arg3: memref<32x32xf32, #tpu.memory_space<vmem>>, %arg4: memref<1x32xf32, #tpu.memory_space<vmem>>, %arg5: memref<2x64x64xf32, #tpu.memory_space<vmem>>, %arg6: memref<32x32xf32, #tpu.memory_space<vmem>>, %arg7: memref<1x32xf32, #tpu.memory_space<vmem>>, %arg8: memref<32x32xf32, #tpu.memory_space<vmem>>, %arg9: memref<32x32xf32, #tpu.memory_space<vmem>>, %arg10: memref<1x32xf32, #tpu.memory_space<vmem>>, %arg11: memref<32x32xf32, #tpu.memory_space<vmem>>, %arg12: memref<1x32xf32, #tpu.memory_space<vmem>>, %arg13: memref<1x2x64xf32, #tpu.memory_space<vmem>>, %arg14: memref<128x32xf32, #tpu.memory_space<vmem>>, %arg15: memref<128x32xf32, #tpu.memory_space<vmem>>, %arg16: memref<2x32xf32, #tpu.memory_space<vmem>>) attributes {dimension_semantics = [#tpu.dimension_semantics<parallel>], iteration_bounds = array<i64: 1>, scalar_prefetch = 1 : i64, scratch_operands = 3 : i64, tpu.core_type = #tpu.core_type<tc>, window_params = [{pipeline_mode = #tpu.pipeline_mode<synchronous>, transform_indices = @transform_0, window_bounds = array<i64: 64, 32>}, {pipeline_mode = #tpu.pipeline_mode<synchronous>, transform_indices = @transform_1, window_bounds = array<i64: 32, 32>}, {pipeline_mode = #tpu.pipeline_mode<synchronous>, transform_indices = @transform_2, window_bounds = array<i64: 1, 32>}, {transform_indices = @transform_3, window_bounds = array<i64: 2, 64, 64>}, {pipeline_mode = #tpu.pipeline_mode<synchronous>, transform_indices = @transform_4, window_bounds = array<i64: 32, 32>}, {pipeline_mode = #tpu.pipeline_mode<synchronous>, transform_indices = @transform_5, window_bounds = array<i64: 1, 32>}, {pipeline_mode = #tpu.pipeline_mode<synchronous>, transform_indices = @transform_6, window_bounds = array<i64: 32, 32>}, {pipeline_mode = #tpu.pipeline_mode<synchronous>, transform_indices = @transform_7, window_bounds = array<i64: 32, 32>}, {pipeline_mode = #tpu.pipeline_mode<synchronous>, transform_indices = @transform_8, window_bounds = array<i64: 1, 32>}, {pipeline_mode = #tpu.pipeline_mode<synchronous>, transform_indices = @transform_9, window_bounds = array<i64: 32, 32>}, {pipeline_mode = #tpu.pipeline_mode<synchronous>, transform_indices = @transform_10, window_bounds = array<i64: 1, 32>}, {transform_indices = @transform_11, window_bounds = array<i64: 1, 2, 64>}]} {
    %c0 = arith.constant 0 : index
    %c0_0 = arith.constant 0 : index
    %0 = vector.load %arg2[%c0, %c0_0] : memref<64x32xf32, #tpu.memory_space<vmem>>, vector<64x32xf32>
    %c0_1 = arith.constant 0 : index
    %c0_2 = arith.constant 0 : index
    %1 = vector.load %arg3[%c0_1, %c0_2] : memref<32x32xf32, #tpu.memory_space<vmem>>, vector<32x32xf32>
    %cst = arith.constant dense<0.000000e+00> : vector<64x32xf32>
    %2 = tpu.matmul %0, %1, %cst {dimension_numbers = #tpu.dot_dimension_numbers<[1], [0], [0], [1], [0, 0, 1, 1], [], []>} : vector<64x32xf32>, vector<32x32xf32>, vector<64x32xf32> -> vector<64x32xf32>
    %c0_3 = arith.constant 0 : index
    %c0_4 = arith.constant 0 : index
    %3 = vector.load %arg4[%c0_3, %c0_4] : memref<1x32xf32, #tpu.memory_space<vmem>>, vector<1x32xf32>
    %4 = vector.broadcast %3 : vector<1x32xf32> to vector<64x32xf32>
    %5 = arith.addf %2, %4 : vector<64x32xf32>
    %c0_5 = arith.constant 0 : index
    %c0_6 = arith.constant 0 : index
    %6 = vector.load %arg7[%c0_5, %c0_6] : memref<1x32xf32, #tpu.memory_space<vmem>>, vector<1x32xf32>
    %7 = vector.broadcast %6 : vector<1x32xf32> to vector<64x32xf32>
    %8 = arith.addf %5, %7 : vector<64x32xf32>
    %cst_7 = arith.constant 0.000000e+00 : f32
    %9 = vector.broadcast %cst_7 : f32 to vector<64x32xf32>
    %10 = arith.maximumf %5, %9 : vector<64x32xf32>
    %c0_8 = arith.constant 0 : index
    %c0_9 = arith.constant 0 : index
    %11 = vector.load %arg6[%c0_8, %c0_9] : memref<32x32xf32, #tpu.memory_space<vmem>>, vector<32x32xf32>
    %c0_10 = arith.constant 0 : index
    %c0_11 = arith.constant 0 : index
    %c0_12 = arith.constant 0 : index
    %12 = vector.load %arg5[%c0_10, %c0_11, %c0_12] : memref<2x64x64xf32, #tpu.memory_space<vmem>>, vector<1x64x64xf32>
    %13 = vector.shape_cast %12 : vector<1x64x64xf32> to vector<64x64xf32>
    %cst_13 = arith.constant dense<0.000000e+00> : vector<64x32xf32>
    %14 = tpu.matmul %13, %10, %cst_13 {dimension_numbers = #tpu.dot_dimension_numbers<[1], [0], [0], [1], [0, 0, 1, 1], [], []>} : vector<64x64xf32>, vector<64x32xf32>, vector<64x32xf32> -> vector<64x32xf32>
    %c0_14 = arith.constant 0 : index
    %c0_15 = arith.constant 0 : index
    %15 = vector.load %arg15[%c0_14, %c0_15] : memref<128x32xf32, #tpu.memory_space<vmem>>, vector<64x32xf32>
    tpu.vector_store %arg15[%c0_14, %c0_15], %14 {strides = array<i32>} : memref<128x32xf32, #tpu.memory_space<vmem>>, vector<64x32xf32>,
    %c1 = arith.constant 1 : index
    %c0_16 = arith.constant 0 : index
    %c0_17 = arith.constant 0 : index
    %16 = vector.load %arg5[%c1, %c0_16, %c0_17] : memref<2x64x64xf32, #tpu.memory_space<vmem>>, vector<1x64x64xf32>
    %17 = vector.shape_cast %16 : vector<1x64x64xf32> to vector<64x64xf32>
    %cst_18 = arith.constant dense<0.000000e+00> : vector<64x32xf32>
    %18 = tpu.matmul %17, %10, %cst_18 {dimension_numbers = #tpu.dot_dimension_numbers<[1], [0], [0], [1], [0, 0, 1, 1], [], []>} : vector<64x64xf32>, vector<64x32xf32>, vector<64x32xf32> -> vector<64x32xf32>
    %c64 = arith.constant 64 : index
    %c0_19 = arith.constant 0 : index
    %19 = vector.load %arg15[%c64, %c0_19] : memref<128x32xf32, #tpu.memory_space<vmem>>, vector<64x32xf32>
    tpu.vector_store %arg15[%c64, %c0_19], %18 {strides = array<i32>} : memref<128x32xf32, #tpu.memory_space<vmem>>, vector<64x32xf32>,
    %c0_20 = arith.constant 0 : index
    %c0_21 = arith.constant 0 : index
    %20 = vector.load %arg15[%c0_20, %c0_21] : memref<128x32xf32, #tpu.memory_space<vmem>>, vector<128x32xf32>
    %cst_22 = arith.constant dense<0.000000e+00> : vector<128x32xf32>
    %21 = tpu.matmul %20, %11, %cst_22 {dimension_numbers = #tpu.dot_dimension_numbers<[1], [0], [0], [1], [0, 0, 1, 1], [], []>} : vector<128x32xf32>, vector<32x32xf32>, vector<128x32xf32> -> vector<128x32xf32>
    %22 = vector.shape_cast %21 : vector<128x32xf32> to vector<2x64x32xf32>
    %23 = vector.shape_cast %8 : vector<64x32xf32> to vector<1x64x32xf32>
    %24 = vector.broadcast %23 : vector<1x64x32xf32> to vector<2x64x32xf32>
    %25 = arith.addf %22, %24 : vector<2x64x32xf32>
    %cst_23 = arith.constant 0.000000e+00 : f32
    %26 = vector.broadcast %cst_23 : f32 to vector<2x64x32xf32>
    %27 = arith.maximumf %25, %26 : vector<2x64x32xf32>
    %28 = vector.shape_cast %27 : vector<2x64x32xf32> to vector<128x32xf32>
    %c0_24 = arith.constant 0 : index
    %c0_25 = arith.constant 0 : index
    %29 = vector.load %arg14[%c0_24, %c0_25] : memref<128x32xf32, #tpu.memory_space<vmem>>, vector<128x32xf32>
    tpu.vector_store %arg14[%c0_24, %c0_25], %28 {strides = array<i32>} : memref<128x32xf32, #tpu.memory_space<vmem>>, vector<128x32xf32>,
    %c0_26 = arith.constant 0 : index
    %c0_27 = arith.constant 0 : index
    %c0_28 = arith.constant 0 : index
    %30 = vector.load %arg5[%c0_26, %c0_27, %c0_28] : memref<2x64x64xf32, #tpu.memory_space<vmem>>, vector<1x64x64xf32>
    %31 = vector.shape_cast %30 : vector<1x64x64xf32> to vector<64x64xf32>
    %c0_29 = arith.constant 0 : index
    %c0_30 = arith.constant 0 : index
    %32 = vector.load %arg14[%c0_29, %c0_30] : memref<128x32xf32, #tpu.memory_space<vmem>>, vector<64x32xf32>
    %cst_31 = arith.constant dense<0.000000e+00> : vector<64x32xf32>
    %33 = tpu.matmul %31, %32, %cst_31 {dimension_numbers = #tpu.dot_dimension_numbers<[1], [0], [0], [1], [0, 0, 1, 1], [], []>} : vector<64x64xf32>, vector<64x32xf32>, vector<64x32xf32> -> vector<64x32xf32>
    %c0_32 = arith.constant 0 : index
    %c0_33 = arith.constant 0 : index
    %34 = vector.load %arg15[%c0_32, %c0_33] : memref<128x32xf32, #tpu.memory_space<vmem>>, vector<64x32xf32>
    tpu.vector_store %arg15[%c0_32, %c0_33], %33 {strides = array<i32>} : memref<128x32xf32, #tpu.memory_space<vmem>>, vector<64x32xf32>,
    %c1_34 = arith.constant 1 : index
    %c0_35 = arith.constant 0 : index
    %c0_36 = arith.constant 0 : index
    %35 = vector.load %arg5[%c1_34, %c0_35, %c0_36] : memref<2x64x64xf32, #tpu.memory_space<vmem>>, vector<1x64x64xf32>
    %36 = vector.shape_cast %35 : vector<1x64x64xf32> to vector<64x64xf32>
    %c64_37 = arith.constant 64 : index
    %c0_38 = arith.constant 0 : index
    %37 = vector.load %arg14[%c64_37, %c0_38] : memref<128x32xf32, #tpu.memory_space<vmem>>, vector<64x32xf32>
    %cst_39 = arith.constant dense<0.000000e+00> : vector<64x32xf32>
    %38 = tpu.matmul %36, %37, %cst_39 {dimension_numbers = #tpu.dot_dimension_numbers<[1], [0], [0], [1], [0, 0, 1, 1], [], []>} : vector<64x64xf32>, vector<64x32xf32>, vector<64x32xf32> -> vector<64x32xf32>
    %c64_40 = arith.constant 64 : index
    %c0_41 = arith.constant 0 : index
    %39 = vector.load %arg15[%c64_40, %c0_41] : memref<128x32xf32, #tpu.memory_space<vmem>>, vector<64x32xf32>
    tpu.vector_store %arg15[%c64_40, %c0_41], %38 {strides = array<i32>} : memref<128x32xf32, #tpu.memory_space<vmem>>, vector<64x32xf32>,
    %c0_42 = arith.constant 0 : index
    %c0_43 = arith.constant 0 : index
    %40 = vector.load %arg15[%c0_42, %c0_43] : memref<128x32xf32, #tpu.memory_space<vmem>>, vector<128x32xf32>
    %cst_44 = arith.constant dense<0.000000e+00> : vector<128x32xf32>
    %41 = tpu.matmul %40, %11, %cst_44 {dimension_numbers = #tpu.dot_dimension_numbers<[1], [0], [0], [1], [0, 0, 1, 1], [], []>} : vector<128x32xf32>, vector<32x32xf32>, vector<128x32xf32> -> vector<128x32xf32>
    %42 = vector.shape_cast %41 : vector<128x32xf32> to vector<2x64x32xf32>
    %43 = vector.shape_cast %8 : vector<64x32xf32> to vector<1x64x32xf32>
    %44 = vector.broadcast %43 : vector<1x64x32xf32> to vector<2x64x32xf32>
    %45 = arith.addf %42, %44 : vector<2x64x32xf32>
    %cst_45 = arith.constant 0.000000e+00 : f32
    %46 = vector.broadcast %cst_45 : f32 to vector<2x64x32xf32>
    %47 = arith.maximumf %45, %46 : vector<2x64x32xf32>
    %48 = vector.shape_cast %47 : vector<2x64x32xf32> to vector<128x32xf32>
    %c0_46 = arith.constant 0 : index
    %c0_47 = arith.constant 0 : index
    %49 = vector.load %arg14[%c0_46, %c0_47] : memref<128x32xf32, #tpu.memory_space<vmem>>, vector<128x32xf32>
    tpu.vector_store %arg14[%c0_46, %c0_47], %48 {strides = array<i32>} : memref<128x32xf32, #tpu.memory_space<vmem>>, vector<128x32xf32>,
    %c2_i32 = arith.constant 2 : i32
    %50 = arith.muli %arg0, %c2_i32 : i32
    %c0_i32 = arith.constant 0 : i32
    %51 = arith.addi %50, %c0_i32 : i32
    %52 = arith.index_cast %51 : i32 to index
    %53 = memref.load %arg1[%52] : memref<2xi32, #tpu.memory_space<smem>>
    %c0_i32_48 = arith.constant 0 : i32
    %c63_i32 = arith.constant 63 : i32
    %54 = arith.maxsi %c0_i32_48, %53 : i32
    %55 = arith.minsi %c63_i32, %54 : i32
    %c0_i32_49 = arith.constant 0 : i32
    %56 = arith.addi %c0_i32_49, %55 : i32
    %57 = arith.index_cast %56 : i32 to index
    %c0_50 = arith.constant 0 : index
    %58 = vector.load %arg14[%57, %c0_50] : memref<128x32xf32, #tpu.memory_space<vmem>>, vector<1x32xf32>
    %c0_51 = arith.constant 0 : index
    %c0_52 = arith.constant 0 : index
    %59 = vector.load %arg16[%c0_51, %c0_52] : memref<2x32xf32, #tpu.memory_space<vmem>>, vector<1x32xf32>
    tpu.vector_store %arg16[%c0_51, %c0_52], %58 {strides = array<i32>} : memref<2x32xf32, #tpu.memory_space<vmem>>, vector<1x32xf32>,
    %c2_i32_53 = arith.constant 2 : i32
    %60 = arith.muli %arg0, %c2_i32_53 : i32
    %c1_i32 = arith.constant 1 : i32
    %61 = arith.addi %60, %c1_i32 : i32
    %62 = arith.index_cast %61 : i32 to index
    %63 = memref.load %arg1[%62] : memref<2xi32, #tpu.memory_space<smem>>
    %c0_i32_54 = arith.constant 0 : i32
    %c63_i32_55 = arith.constant 63 : i32
    %64 = arith.maxsi %c0_i32_54, %63 : i32
    %65 = arith.minsi %c63_i32_55, %64 : i32
    %c64_i32 = arith.constant 64 : i32
    %66 = arith.addi %c64_i32, %65 : i32
    %67 = arith.index_cast %66 : i32 to index
    %c0_56 = arith.constant 0 : index
    %68 = vector.load %arg14[%67, %c0_56] : memref<128x32xf32, #tpu.memory_space<vmem>>, vector<1x32xf32>
    %c1_57 = arith.constant 1 : index
    %c0_58 = arith.constant 0 : index
    %69 = vector.load %arg16[%c1_57, %c0_58] : memref<2x32xf32, #tpu.memory_space<vmem>>, vector<1x32xf32>
    tpu.vector_store %arg16[%c1_57, %c0_58], %68 {strides = array<i32>} : memref<2x32xf32, #tpu.memory_space<vmem>>, vector<1x32xf32>,
    %c0_59 = arith.constant 0 : index
    %c0_60 = arith.constant 0 : index
    %70 = vector.load %arg16[%c0_59, %c0_60] : memref<2x32xf32, #tpu.memory_space<vmem>>, vector<2x32xf32>
    %c0_61 = arith.constant 0 : index
    %c0_62 = arith.constant 0 : index
    %71 = vector.load %arg14[%c0_61, %c0_62] : memref<128x32xf32, #tpu.memory_space<vmem>>, vector<128x32xf32>
    %72 = vector.shape_cast %71 : vector<128x32xf32> to vector<2x64x32xf32>
    %cst_63 = arith.constant dense<0.000000e+00> : vector<2x32xf32>
    %73 = vector.multi_reduction <add>, %72, %cst_63 [1] : vector<2x64x32xf32> to vector<2x32xf32>
    %cst_64 = arith.constant 6.400000e+01 : f32
    %74 = vector.broadcast %cst_64 : f32 to vector<2x32xf32>
    %75 = arith.divf %73, %74 : vector<2x32xf32>
    %c0_65 = arith.constant 0 : index
    %c0_66 = arith.constant 0 : index
    %76 = vector.load %arg14[%c0_65, %c0_66] : memref<128x32xf32, #tpu.memory_space<vmem>>, vector<128x32xf32>
    %c0_67 = arith.constant 0 : index
    %c0_68 = arith.constant 0 : index
    %77 = vector.load %arg8[%c0_67, %c0_68] : memref<32x32xf32, #tpu.memory_space<vmem>>, vector<32x32xf32>
    %cst_69 = arith.constant dense<0.000000e+00> : vector<128x32xf32>
    %78 = tpu.matmul %76, %77, %cst_69 {dimension_numbers = #tpu.dot_dimension_numbers<[1], [0], [0], [1], [0, 0, 1, 1], [], []>} : vector<128x32xf32>, vector<32x32xf32>, vector<128x32xf32> -> vector<128x32xf32>
    %c0_70 = arith.constant 0 : index
    %c0_71 = arith.constant 0 : index
    %79 = vector.load %arg9[%c0_70, %c0_71] : memref<32x32xf32, #tpu.memory_space<vmem>>, vector<32x32xf32>
    %cst_72 = arith.constant dense<0.000000e+00> : vector<2x32xf32>
    %80 = tpu.matmul %75, %79, %cst_72 {dimension_numbers = #tpu.dot_dimension_numbers<[1], [0], [0], [1], [0, 0, 1, 1], [], []>} : vector<2x32xf32>, vector<32x32xf32>, vector<2x32xf32> -> vector<2x32xf32>
    %c0_73 = arith.constant 0 : index
    %c0_74 = arith.constant 0 : index
    %81 = vector.load %arg10[%c0_73, %c0_74] : memref<1x32xf32, #tpu.memory_space<vmem>>, vector<1x32xf32>
    %82 = vector.broadcast %81 : vector<1x32xf32> to vector<2x32xf32>
    %83 = arith.addf %80, %82 : vector<2x32xf32>
    %84 = vector.shape_cast %78 : vector<128x32xf32> to vector<2x64x32xf32>
    %85 = vector.shape_cast %83 : vector<2x32xf32> to vector<2x1x32xf32>
    %86 = vector.broadcast %85 : vector<2x1x32xf32> to vector<2x64x32xf32>
    %87 = arith.addf %84, %86 : vector<2x64x32xf32>
    %cst_75 = arith.constant 0.000000e+00 : f32
    %88 = vector.broadcast %cst_75 : f32 to vector<2x64x32xf32>
    %89 = arith.maximumf %87, %88 : vector<2x64x32xf32>
    %c0_76 = arith.constant 0 : index
    %c0_77 = arith.constant 0 : index
    %90 = vector.load %arg11[%c0_76, %c0_77] : memref<32x32xf32, #tpu.memory_space<vmem>>, vector<32x32xf32>
    %cst_78 = arith.constant dense<0.000000e+00> : vector<2x32xf32>
    %91 = tpu.matmul %70, %90, %cst_78 {dimension_numbers = #tpu.dot_dimension_numbers<[1], [0], [0], [1], [0, 0, 1, 1], [], []>} : vector<2x32xf32>, vector<32x32xf32>, vector<2x32xf32> -> vector<2x32xf32>
    %c0_79 = arith.constant 0 : index
    %c0_80 = arith.constant 0 : index
    %92 = vector.load %arg12[%c0_79, %c0_80] : memref<1x32xf32, #tpu.memory_space<vmem>>, vector<1x32xf32>
    %93 = vector.broadcast %92 : vector<1x32xf32> to vector<2x32xf32>
    %94 = arith.mulf %70, %93 : vector<2x32xf32>
    %cst_81 = arith.constant dense<0.000000e+00> : vector<2xf32>
    %95 = vector.multi_reduction <add>, %94, %cst_81 [1] : vector<2x32xf32> to vector<2xf32>
    %96 = vector.shape_cast %95 : vector<2xf32> to vector<2x1xf32>
    %97 = vector.shape_cast %91 : vector<2x32xf32> to vector<2x1x32xf32>
    %98 = vector.broadcast %97 : vector<2x1x32xf32> to vector<2x64x32xf32>
    %99 = arith.mulf %89, %98 : vector<2x64x32xf32>
    %cst_82 = arith.constant dense<0.000000e+00> : vector<2x64xf32>
    %100 = vector.multi_reduction <add>, %99, %cst_82 [2] : vector<2x64x32xf32> to vector<2x64xf32>
    %101 = vector.broadcast %96 : vector<2x1xf32> to vector<2x64xf32>
    %102 = arith.addf %100, %101 : vector<2x64xf32>
    %c0_83 = arith.constant 0 : index
    %c0_84 = arith.constant 0 : index
    %c0_85 = arith.constant 0 : index
    %103 = vector.load %arg13[%c0_83, %c0_84, %c0_85] : memref<1x2x64xf32, #tpu.memory_space<vmem>>, vector<1x2x64xf32>
    %104 = vector.shape_cast %103 : vector<1x2x64xf32> to vector<2x64xf32>
    %105 = vector.shape_cast %102 : vector<2x64xf32> to vector<1x2x64xf32>
    tpu.vector_store %arg13[%c0_83, %c0_84, %c0_85], %105 {strides = array<i32>} : memref<1x2x64xf32, #tpu.memory_space<vmem>>, vector<1x2x64xf32>,
    return
  }
  func.func @transform_0(%arg0: i32, %arg1: memref<2xi32, #tpu.memory_space<smem>>) -> (i32, i32) {
    %c0_i32 = arith.constant 0 : i32
    %c0_i32_0 = arith.constant 0 : i32
    %c0_i32_1 = arith.constant 0 : i32
    return %c0_i32, %c0_i32_0 : i32, i32
  }
  func.func @transform_1(%arg0: i32, %arg1: memref<2xi32, #tpu.memory_space<smem>>) -> (i32, i32) {
    %c0_i32 = arith.constant 0 : i32
    %c0_i32_0 = arith.constant 0 : i32
    %c0_i32_1 = arith.constant 0 : i32
    return %c0_i32, %c0_i32_0 : i32, i32
  }
  func.func @transform_2(%arg0: i32, %arg1: memref<2xi32, #tpu.memory_space<smem>>) -> (i32, i32) {
    %c0_i32 = arith.constant 0 : i32
    %c0_i32_0 = arith.constant 0 : i32
    %c0_i32_1 = arith.constant 0 : i32
    return %c0_i32, %c0_i32_0 : i32, i32
  }
  func.func @transform_3(%arg0: i32, %arg1: memref<2xi32, #tpu.memory_space<smem>>) -> (i32, i32, i32) {
    %c0_i32 = arith.constant 0 : i32
    %c0_i32_0 = arith.constant 0 : i32
    %c0_i32_1 = arith.constant 0 : i32
    return %arg0, %c0_i32, %c0_i32_0 : i32, i32, i32
  }
  func.func @transform_4(%arg0: i32, %arg1: memref<2xi32, #tpu.memory_space<smem>>) -> (i32, i32) {
    %c0_i32 = arith.constant 0 : i32
    %c0_i32_0 = arith.constant 0 : i32
    %c0_i32_1 = arith.constant 0 : i32
    return %c0_i32, %c0_i32_0 : i32, i32
  }
  func.func @transform_5(%arg0: i32, %arg1: memref<2xi32, #tpu.memory_space<smem>>) -> (i32, i32) {
    %c0_i32 = arith.constant 0 : i32
    %c0_i32_0 = arith.constant 0 : i32
    %c0_i32_1 = arith.constant 0 : i32
    return %c0_i32, %c0_i32_0 : i32, i32
  }
  func.func @transform_6(%arg0: i32, %arg1: memref<2xi32, #tpu.memory_space<smem>>) -> (i32, i32) {
    %c0_i32 = arith.constant 0 : i32
    %c0_i32_0 = arith.constant 0 : i32
    %c0_i32_1 = arith.constant 0 : i32
    return %c0_i32, %c0_i32_0 : i32, i32
  }
  func.func @transform_7(%arg0: i32, %arg1: memref<2xi32, #tpu.memory_space<smem>>) -> (i32, i32) {
    %c0_i32 = arith.constant 0 : i32
    %c0_i32_0 = arith.constant 0 : i32
    %c0_i32_1 = arith.constant 0 : i32
    return %c0_i32, %c0_i32_0 : i32, i32
  }
  func.func @transform_8(%arg0: i32, %arg1: memref<2xi32, #tpu.memory_space<smem>>) -> (i32, i32) {
    %c0_i32 = arith.constant 0 : i32
    %c0_i32_0 = arith.constant 0 : i32
    %c0_i32_1 = arith.constant 0 : i32
    return %c0_i32, %c0_i32_0 : i32, i32
  }
  func.func @transform_9(%arg0: i32, %arg1: memref<2xi32, #tpu.memory_space<smem>>) -> (i32, i32) {
    %c0_i32 = arith.constant 0 : i32
    %c0_i32_0 = arith.constant 0 : i32
    %c0_i32_1 = arith.constant 0 : i32
    return %c0_i32, %c0_i32_0 : i32, i32
  }
  func.func @transform_10(%arg0: i32, %arg1: memref<2xi32, #tpu.memory_space<smem>>) -> (i32, i32) {
    %c0_i32 = arith.constant 0 : i32
    %c0_i32_0 = arith.constant 0 : i32
    %c0_i32_1 = arith.constant 0 : i32
    return %c0_i32, %c0_i32_0 : i32, i32
  }
  func.func @transform_11(%arg0: i32, %arg1: memref<2xi32, #tpu.memory_space<smem>>) -> (i32, i32, i32) {
    %c0_i32 = arith.constant 0 : i32
    %c0_i32_0 = arith.constant 0 : i32
    %c0_i32_1 = arith.constant 0 : i32
    return %arg0, %c0_i32, %c0_i32_0 : i32, i32, i32
  }
}

</mosaic_0001>

<bundles_post_ra>
// kernel: tpu_custom_call.1
= control target key start
LH: loop header
LB: loop body
LE: loop exit
PB: predicated region body
PF: predicated region fallthrough
CT: control target
= control target key end

     0   :  { %s1688_s24 = smov [#allocation6]   ;;  %s2231_s0 = inlined_call_operand.hbm [shape: s32[2], index: 0, kind: input, shape index: {}]   ;;  %s2232_s1 = inlined_call_operand.vmem [shape: f32[64,32], index: 1, kind: input, shape index: {}]   ;;  %s2233_s2 = inlined_call_operand.vmem [shape: f32[32,32], index: 2, kind: input, shape index: {}]   ;;  %s2234_s3 = inlined_call_operand.vmem [shape: f32[1,32], index: 3, kind: input, shape index: {}]   ;;  %s2235_s4 = inlined_call_operand.hbm [shape: f32[2,64,64], index: 4, kind: input, shape index: {}]   ;;  %s2236_s5 = inlined_call_operand.vmem [shape: f32[32,32], index: 5, kind: input, shape index: {}]   ;;  %s2237_s6 = inlined_call_operand.vmem [shape: f32[1,32], index: 6, kind: input, shape index: {}]   ;;  %s2238_s7 = inlined_call_operand.vmem [shape: f32[32,32], index: 7, kind: input, shape index: {}]   ;;  %s2239_s8 = inlined_call_operand.hbm [shape: f32[32,32], index: 8, kind: input, shape index: {}]   ;;  %s2240_s9 = inlined_call_operand.vmem [shape: f32[1,32], index: 9, kind: input, shape index: {}]   ;;  %s2241_s10 = inlined_call_operand.hbm [shape: f32[32,32], index: 10, kind: input, shape index: {}]   ;;  %s2242_s11 = inlined_call_operand.vmem [shape: f32[1,32], index: 11, kind: input, shape index: {}]   ;;  %s2243_s12 = inlined_call_operand.hbm [shape: f32[1,2,64], index: 12, kind: output, shape index: {}]  }
   0x1   :  { %s18_s23 = sshll.u32 %s2231_s0, 4  ;;  %s19_s23 = int_to_ptr.hbm [resolvable:$true] %s18_s23 }
   0x2   :  { %21 = dma.hbm_to_smem %s19_s23, 16, %s1688_s24, [#allocation5] }
   0x3   :  { %1680 = dma.done.wait [#allocation5], 16 }
   0x4   :  { %1681 = vsyncadd [#allocation5], 4294967280 }
   0x5   :  { %24 = sfence }
   0x6   :  { %25 = vsyncpa [#allocation8], 0 }
   0x7   :  { %26 = vsyncpa [#allocation11], 0 }
   0x8   :  { %27 = vsyncpa [#allocation9], 0  ;;  %s57_s27 = sshll.u32 %s2239_s8, 4  ;;  %s1689_s28 = smov [#allocation10]   ;;  %s58_s27 = int_to_ptr.hbm [resolvable:$true] %s57_s27 }
   0x9   :  { %s59_s29 = sshll.u32 %s1689_s28, 4  ;;  %s38_s0 = sshll.u32 %s2235_s4, 4  ;;  %s60_s29 = int_to_ptr.vmem [resolvable:$true] %s59_s29  ;;  %s39_s0 = int_to_ptr.hbm [resolvable:$true] %s38_s0 }
   0xa   :  { %s1690_s14 = smov 128   ;;  %s1691_s15 = smov 8  }
   0xb   :  { %65 = dma.hbm_to_vmem [thread:$0]  %s58_s27, 512, %s60_s29, [#allocation11], %s1690_s14, %s1690_s14, %s1691_s15  }
   0xc   :  { %s1692_s16 = smov [#allocation7]   ;;  %s72_s20 = sshll.u32 %s2241_s10, 4  ;;  %s73_s20 = int_to_ptr.hbm [resolvable:$true] %s72_s20 }
   0xd   :  { %s40_s17 = sshll.u32 %s1692_s16, 4  ;;  %s1693_s8 = smov [#allocation12]   ;;  %s41_s17 = int_to_ptr.vmem [resolvable:$true] %s40_s17 }
   0xe   :  { %46 = dma.hbm_to_vmem [thread:$0]  %s39_s0, 2048, %s41_s17, [#allocation8], %s1690_s14, %s1690_s14, %s1691_s15  }
   0xf   :  { %s74_s21 = sshll.u32 %s1693_s8, 4  ;;  %s75_s21 = int_to_ptr.vmem [resolvable:$true] %s74_s21 }
  0x10   :  { %80 = dma.hbm_to_vmem [thread:$0]  %s73_s20, 512, %s75_s21, [#allocation11], %s1690_s14, %s1690_s14, %s1691_s15  }
  0x11   :  { %1682 = dma.done.wait [#allocation8], 2048  }
  0x12   :  { %1683 = vsyncadd [#allocation8], 4294965248 }
  0x13   :  { %1684 = dma.done.wait [#allocation11], 1024  }
  0x14   :  { %1685 = vsyncadd [#allocation11], 4294966272  ;;  %v106_v0 = vld [vmem:[%s2233_s2 + $0x18] sm:$0xff]  ;;  %v105_v1 = vld [vmem:[%s2233_s2 + $0x10] sm:$0xff]  ;;  %vm111_vm0 = vcmask 261120   ;;  %vm209_vm1 = vcmask 523264  }
  0x15   :  { %1542 = vmatpush.msra.mxu3 %v106_v0  ;;  %148 = vmatpush.msra.mxu1 %v106_v0  ;;  %v104_v2 = vld [vmem:[%s2233_s2 + $0x8] sm:$0xff]  ;;  %v103_v3 = vld [vmem:[%s2233_s2] sm:$0xff]  ;;  %v97_v4 = vld [vmem:[%s2232_s1 + $0x10] sm:$0xff]  ;;  %s2161_s17 = sld [smem:[#allocation6 + $0x1]]  ;;  %vm905_vm2 = vcmask 253952   ;;  %vm1206_vm3 = vcmask 254976  }
  0x16   :  { %v98_v5 = vld [vmem:[%s2232_s1 + $0x18] sm:$0xff]  ;;  %v95_v6 = vld [vmem:[%s2232_s1] sm:$0xff]  ;;  %v96_v8 = vld [vmem:[%s2232_s1 + $0x8] sm:$0xff]  ;;  %vm1112_vm5 = vcmask 1041409   ;;  %vm1370_vm6 = vcmask 130112   ;;  %vm1374_vm7 = vcmask 195712  }
  0x17   :  { %1543 = vmatpush.msra.mxu3 %v105_v1  ;;  %149 = vmatpush.msra.mxu1 %v105_v1  ;;  %v99_v7 = vld [vmem:[%s2232_s1 + $0x20] sm:$0xff]  ;;  %v100_v9 = vld [vmem:[%s2232_s1 + $0x28] sm:$0xff]  ;;  %v101_v10 = vld [vmem:[%s2232_s1 + $0x30] sm:$0xff]  ;;  %vm1378_vm8 = vcmask 261312   ;;  %vm1382_vm9 = vcmask 326912   ;;  %vm1386_vm10 = vcmask 392512  }
  0x18   :  { %v102_v11 = vld [vmem:[%s2232_s1 + $0x38] sm:$0xff]  ;;  %v1566_v18 = vld [vmem:[%s2234_s3] ss:$0 sm:$0xff]  ;;  %v1845_v37 = vld [vmem:[#allocation7] sm:$0xff]  ;;  %vm1390_vm11 = vcmask 458112   ;;  %vm1394_vm12 = vcmask 523712  }
  0x19   :  { %1544 = vmatpush.msra.mxu3 %v104_v2  ;;  %150 = vmatpush.msra.mxu1 %v104_v2  ;;  %v1849_v38 = vld [vmem:[#allocation7 + $0x8] sm:$0xff]  ;;  %v1853_v39 = vld [vmem:[#allocation7 + $0x10] sm:$0xff]  ;;  %v1857_v40 = vld [vmem:[#allocation7 + $0x18] sm:$0xff]  ;;  %s1422_s24 = sshll.u32 %s2243_s12, 4  ;;  %vm1413_vm13 = vcmask 517120   ;;  %s1423_s24 = int_to_ptr.hbm [resolvable:$true] %s1422_s24 }
  0x1a   :  { %v1861_v41 = vld [vmem:[#allocation7 + $0x40] sm:$0xff]  ;;  %v1867_v43 = vld [vmem:[#allocation7 + $0x48] sm:$0xff]  ;;  %v1875_v45 = vld [vmem:[#allocation7 + $0x50] sm:$0xff] }
  0x1b   :  { %1545 = vmatpush.msra.mxu3 %v103_v3  ;;  %151 = vmatpush.msra.mxu1 %v103_v3  ;;  %v1865_v42 = vld [vmem:[#allocation7 + $0x20] sm:$0xff]  ;;  %v1873_v44 = vld [vmem:[#allocation7 + $0x28] sm:$0xff]  ;;  %v1881_v46 = vld [vmem:[#allocation7 + $0x30] sm:$0xff]  ;;  %p909_p1 = scmp.gt.s32.totalorder %s2161_s17, 0  ;;  %p1514_p3 = scmp.lt.s32.totalorder %s2161_s17, 63 }
  0x1c   :  { %1438 = vmatmul.msk.f32.vlgmr.msra.gmra.mxu3 %vm111_vm0, %v97_v4  ;;  %1436 = vmatmul.msk.f32.vlgmr.msra.gmra.mxu1 %vm111_vm0, %v95_v6  ;;  %v1883_v47 = vld [vmem:[#allocation7 + $0x58] sm:$0xff]  ;;  %v1891_v49 = vld [vmem:[#allocation7 + $0x60] sm:$0xff]  ;;  %v1897_v50 = vld [vmem:[#allocation7 + $0x68] sm:$0xff] }
  0x1d   :  { %v1889_v48 = vld [vmem:[#allocation7 + $0x38] sm:$0xff]  ;;  %v1901_v51 = vld [vmem:[#allocation7 + $0x70] sm:$0xff]  ;;  %v1924_v55 = vld [vmem:[%s2236_s5 + $0x8] sm:$0xff]  ;;  %s910_s19 = scalar_select %p909_p1, %s2161_s17, 0 }
  0x1e   :  { %v1905_v52 = vld [vmem:[#allocation7 + $0x78] sm:$0xff]  ;;  %v1917_v54 = vld [vmem:[%s2236_s5 + $0x10] sm:$0xff] }
  0x1f   :  { %v1912_v53 = vld [vmem:[%s2236_s5 + $0x18] sm:$0xff]  ;;  %v1933_v56 = vld [vmem:[%s2236_s5] sm:$0xff]  ;;  %s2247_s19 = smov (!%p1514_p3, %s910_s19), 63 }
  0x20   :  { %441 = vmatpush.msrb.mxu3 %v1912_v53  ;;  %s1434_s8 = scalar_lea.vmem [#allocation2], %s2247_s19 }
  0x22   :  { %442 = vmatpush.msrb.mxu3 %v1917_v54 }
  0x24   :  { %1439 = vmatmul.msk.f32.gmra.mxu3 %vm111_vm0, %v98_v5  ;;  %1437 = vmatmul.msk.f32.gmra.mxu1 %vm111_vm0, %v96_v8 }
  0x25   :  { %443 = vmatpush.msrb.mxu3 %v1924_v55 }
  0x27   :  { %444 = vmatpush.msrb.mxu3 %v1933_v56 }
  0x2c   :  { %1440 = vmatmul.msk.f32.gmra.mxu3 %vm111_vm0, %v99_v7 }
  0x34   :  { %1441 = vmatmul.msk.f32.gmra.mxu3 %vm111_vm0, %v100_v9 }
  0x3c   :  { %1442 = vmatmul.msk.f32.gmra.mxu3 %vm111_vm0, %v101_v10 }
  0x44   :  { %1443 = vmatmul.msk.f32.gmra.mxu3 %vm111_vm0, %v102_v11 }
  0x99   :  { %v153_v17 = vpop.f32.mrf.mxu1 }
  0x9a   :  { %v1840_v33 = vadd.f32 %v1566_v18, %v153_v17 }
  0x9c   :  { %v189_v36 = vmax.f32 %v1840_v33, 0.0 }
  0x9f   :  { %v159_v12 = vpop.f32.mrf.mxu3 }
  0xa0   :  { %v1834_v29 = vadd.f32 %v1566_v18, %v159_v12 }
  0xa1   :  { %v156_v26 = vpop.f32.mrf.mxu1 }
  0xa2   :  { %v1837_v31 = vadd.f32 %v1566_v18, %v156_v26  ;;  %v191_v34 = vmax.f32 %v1834_v29, 0.0 }
  0xa4   :  { %v190_v35 = vmax.f32 %v1837_v31, 0.0 }
  0xa7   :  { %v162_v13 = vpop.f32.mrf.mxu3 }
  0xa8   :  { %v1831_v27 = vadd.f32 %v1566_v18, %v162_v13 }
  0xaa   :  { %v192_v32 = vmax.f32 %v1831_v27, 0.0 }
  0xaf   :  { %v165_v14 = vpop.f32.mrf.mxu3 }
  0xb0   :  { %v1828_v24 = vadd.f32 %v1566_v18, %v165_v14 }
  0xb2   :  { %v193_v30 = vmax.f32 %v1828_v24, 0.0 }
  0xb7   :  { %v168_v15 = vpop.f32.mrf.mxu3 }
  0xb8   :  { %v1825_v22 = vadd.f32 %v1566_v18, %v168_v15 }
  0xba   :  { %v194_v28 = vmax.f32 %v1825_v22, 0.0 }
  0xbf   :  { %v171_v16 = vpop.f32.mrf.mxu3 }
  0xc0   :  { %v1821_v20 = vadd.f32 %v1566_v18, %v171_v16 }
  0xc2   :  { %v195_v25 = vmax.f32 %v1821_v20, 0.0 }
  0xc7   :  { %v174_v19 = vpop.f32.mrf.mxu3 }
  0xc8   :  { %v1823_v21 = vadd.f32 %v1566_v18, %v174_v19 }
  0xca   :  { %v196_v23 = vmax.f32 %v1823_v21, 0.0 }
  0xcc   :  { %242 = vmatpush.msrb.mxu1 %v196_v23  ;;  %324 = vmatpush.msra.mxu2 %v196_v23 }
  0xce   :  { %243 = vmatpush.msrb.mxu1 %v195_v25  ;;  %325 = vmatpush.msra.mxu2 %v195_v25 }
  0xd0   :  { %244 = vmatpush.msrb.mxu1 %v194_v28  ;;  %326 = vmatpush.msra.mxu2 %v194_v28 }
  0xd2   :  { %245 = vmatpush.msrb.mxu1 %v193_v30  ;;  %327 = vmatpush.msra.mxu2 %v193_v30 }
  0xd4   :  { %246 = vmatpush.msrb.mxu1 %v192_v32  ;;  %328 = vmatpush.msra.mxu2 %v192_v32  ;;  %v1567_v32 = vld [vmem:[%s2237_s6] ss:$0 sm:$0xff] }
  0xd6   :  { %247 = vmatpush.msrb.mxu1 %v191_v34  ;;  %329 = vmatpush.msra.mxu2 %v191_v34  ;;  %v1973_v34 = vadd.f32 %v1567_v32, %v1840_v33 }
  0xd8   :  { %248 = vmatpush.msrb.mxu1 %v190_v35  ;;  %330 = vmatpush.msra.mxu2 %v190_v35 }
  0xda   :  { %249 = vmatpush.msrb.mxu1 %v189_v36  ;;  %331 = vmatpush.msra.mxu2 %v189_v36 }
  0xdb   :  { %1444 = vmatmul.msk.f32.vlgmr.msrb.gmra.mxu1 %vm209_vm1, %v1845_v37  ;;  %1452 = vmatmul.msk.f32.vlgmr.msra.gmra.mxu2 %vm209_vm1, %v1861_v41 }
  0xdc   :  { %1546 = vmatpush.msrb.mxu2 %v1912_v53 }
  0xde   :  { %1547 = vmatpush.msrb.mxu2 %v1917_v54 }
  0xe0   :  { %1548 = vmatpush.msrb.mxu2 %v1924_v55 }
  0xe2   :  { %1549 = vmatpush.msrb.mxu2 %v1933_v56 }
  0xe3   :  { %1445 = vmatmul.msk.f32.gmra.mxu1 %vm209_vm1, %v1849_v38  ;;  %1453 = vmatmul.msk.f32.gmra.mxu2 %vm209_vm1, %v1867_v43 }
  0xeb   :  { %1446 = vmatmul.msk.f32.gmra.mxu1 %vm209_vm1, %v1853_v39  ;;  %1454 = vmatmul.msk.f32.gmra.mxu2 %vm209_vm1, %v1875_v45 }
  0xf3   :  { %1447 = vmatmul.msk.f32.gmra.mxu1 %vm209_vm1, %v1857_v40  ;;  %1455 = vmatmul.msk.f32.gmra.mxu2 %vm209_vm1, %v1883_v47 }
  0xfb   :  { %1448 = vmatmul.msk.f32.gmra.mxu1 %vm209_vm1, %v1865_v42  ;;  %1456 = vmatmul.msk.f32.gmra.mxu2 %vm209_vm1, %v1891_v49 }
 0x103   :  { %1449 = vmatmul.msk.f32.gmra.mxu1 %vm209_vm1, %v1873_v44  ;;  %1457 = vmatmul.msk.f32.gmra.mxu2 %vm209_vm1, %v1897_v50 }
 0x10b   :  { %1450 = vmatmul.msk.f32.gmra.mxu1 %vm209_vm1, %v1881_v46  ;;  %1458 = vmatmul.msk.f32.gmra.mxu2 %vm209_vm1, %v1901_v51 }
 0x113   :  { %1451 = vmatmul.msk.f32.gmra.mxu1 %vm209_vm1, %v1889_v48  ;;  %1459 = vmatmul.msk.f32.gmra.mxu2 %vm209_vm1, %v1905_v52 }
 0x158   :  { %v251_v57 = vpop.f32.mrf.mxu1 }
 0x159   :  { %275 = vst.msk [vmem:[#allocation3] sm:$0xff] %vm111_vm0, %v251_v57 }
 0x15e   :  { %v333_v0 = vpop.f32.mrf.mxu2 }
 0x15f   :  { %357 = vst.msk [vmem:[#allocation3 + $0x40] sm:$0xff] %vm111_vm0, %v333_v0 }
 0x160   :  { %v254_v58 = vpop.f32.mrf.mxu1  ;;  %v365_v59 = vld [vmem:[#allocation3] sm:$0xff] }
 0x161   :  { %276 = vst.msk [vmem:[#allocation3 + $0x8] sm:$0xff] %vm111_vm0, %v254_v58  ;;  %1460 = vmatmul.msk.f32.vlgmr.msrb.gmra.mxu3 %vm111_vm0, %v365_v59  ;;  %v1978_v58 = vadd.f32 %v1567_v32, %v1837_v31 }
 0x166   :  { %v336_v3 = vpop.f32.mrf.mxu2  ;;  %v373_v14 = vld [vmem:[#allocation3 + $0x40] sm:$0xff] }
 0x167   :  { %358 = vst.msk [vmem:[#allocation3 + $0x48] sm:$0xff] %vm111_vm0, %v336_v3 }
 0x168   :  { %v257_v60 = vpop.f32.mrf.mxu1  ;;  %v366_v61 = vld [vmem:[#allocation3 + $0x8] sm:$0xff] }
 0x169   :  { %277 = vst.msk [vmem:[#allocation3 + $0x10] sm:$0xff] %vm111_vm0, %v257_v60  ;;  %1461 = vmatmul.msk.f32.gmra.mxu3 %vm111_vm0, %v366_v61 }
 0x16e   :  { %v339_v6 = vpop.f32.mrf.mxu2  ;;  %v374_v16 = vld [vmem:[#allocation3 + $0x48] sm:$0xff] }
 0x16f   :  { %359 = vst.msk [vmem:[#allocation3 + $0x50] sm:$0xff] %vm111_vm0, %v339_v6 }
 0x170   :  { %v260_v62 = vpop.f32.mrf.mxu1  ;;  %v367_v63 = vld [vmem:[#allocation3 + $0x10] sm:$0xff] }
 0x171   :  { %278 = vst.msk [vmem:[#allocation3 + $0x18] sm:$0xff] %vm111_vm0, %v260_v62  ;;  %1462 = vmatmul.msk.f32.gmra.mxu3 %vm111_vm0, %v367_v63  ;;  %v1983_v62 = vadd.f32 %v1567_v32, %v1834_v29 }
 0x176   :  { %v342_v9 = vpop.f32.mrf.mxu2  ;;  %v375_v18 = vld [vmem:[#allocation3 + $0x50] sm:$0xff] }
 0x177   :  { %360 = vst.msk [vmem:[#allocation3 + $0x58] sm:$0xff] %vm111_vm0, %v342_v9 }
 0x178   :  { %v263_v1 = vpop.f32.mrf.mxu1  ;;  %v368_v2 = vld [vmem:[#allocation3 + $0x18] sm:$0xff] }
 0x179   :  { %279 = vst.msk [vmem:[#allocation3 + $0x20] sm:$0xff] %vm111_vm0, %v263_v1  ;;  %1463 = vmatmul.msk.f32.gmra.mxu3 %vm111_vm0, %v368_v2  ;;  %v1988_v1 = vadd.f32 %v1567_v32, %v1831_v27 }
 0x17e   :  { %v345_v12 = vpop.f32.mrf.mxu2  ;;  %v376_v23 = vld [vmem:[#allocation3 + $0x58] sm:$0xff] }
 0x17f   :  { %361 = vst.msk [vmem:[#allocation3 + $0x60] sm:$0xff] %vm111_vm0, %v345_v12 }
 0x180   :  { %v266_v4 = vpop.f32.mrf.mxu1  ;;  %v369_v5 = vld [vmem:[#allocation3 + $0x20] sm:$0xff] }
 0x181   :  { %280 = vst.msk [vmem:[#allocation3 + $0x28] sm:$0xff] %vm111_vm0, %v266_v4  ;;  %1464 = vmatmul.msk.f32.gmra.mxu3 %vm111_vm0, %v369_v5  ;;  %v1993_v4 = vadd.f32 %v1567_v32, %v1828_v24 }
 0x186   :  { %v348_v15 = vpop.f32.mrf.mxu2  ;;  %v377_v25 = vld [vmem:[#allocation3 + $0x60] sm:$0xff] }
 0x187   :  { %362 = vst.msk [vmem:[#allocation3 + $0x68] sm:$0xff] %vm111_vm0, %v348_v15 }
 0x188   :  { %v269_v7 = vpop.f32.mrf.mxu1  ;;  %v370_v8 = vld [vmem:[#allocation3 + $0x28] sm:$0xff] }
 0x189   :  { %281 = vst.msk [vmem:[#allocation3 + $0x30] sm:$0xff] %vm111_vm0, %v269_v7  ;;  %1465 = vmatmul.msk.f32.gmra.mxu3 %vm111_vm0, %v370_v8  ;;  %v1998_v7 = vadd.f32 %v1567_v32, %v1825_v22 }
 0x18e   :  { %v351_v17 = vpop.f32.mrf.mxu2  ;;  %v378_v26 = vld [vmem:[#allocation3 + $0x68] sm:$0xff] }
 0x18f   :  { %363 = vst.msk [vmem:[#allocation3 + $0x70] sm:$0xff] %vm111_vm0, %v351_v17 }
 0x190   :  { %v272_v10 = vpop.f32.mrf.mxu1  ;;  %v371_v11 = vld [vmem:[#allocation3 + $0x30] sm:$0xff] }
 0x191   :  { %282 = vst.msk [vmem:[#allocation3 + $0x38] sm:$0xff] %vm111_vm0, %v272_v10  ;;  %1466 = vmatmul.msk.f32.gmra.mxu3 %vm111_vm0, %v371_v11  ;;  %v2003_v10 = vadd.f32 %v1567_v32, %v1821_v20 }
 0x196   :  { %v354_v19 = vpop.f32.mrf.mxu2  ;;  %v379_v28 = vld [vmem:[#allocation3 + $0x70] sm:$0xff] }
 0x197   :  { %364 = vst.msk [vmem:[#allocation3 + $0x78] sm:$0xff] %vm111_vm0, %v354_v19 }
 0x198   :  { %v372_v13 = vld [vmem:[#allocation3 + $0x38] sm:$0xff] }
 0x199   :  { %1467 = vmatmul.msk.f32.gmra.mxu3 %vm111_vm0, %v372_v13  ;;  %v2008_v13 = vadd.f32 %v1567_v32, %v1823_v21 }
 0x19e   :  { %v380_v30 = vld [vmem:[#allocation3 + $0x78] sm:$0xff] }
 0x1a1   :  { %1468 = vmatmul.msk.f32.gmra.mxu3 %vm111_vm0, %v373_v14 }
 0x1a9   :  { %1469 = vmatmul.msk.f32.gmra.mxu3 %vm111_vm0, %v374_v16 }
 0x1b1   :  { %1470 = vmatmul.msk.f32.gmra.mxu3 %vm111_vm0, %v375_v18 }
 0x1b9   :  { %1471 = vmatmul.msk.f32.gmra.mxu3 %vm111_vm0, %v376_v23 }
 0x1c1   :  { %1472 = vmatmul.msk.f32.gmra.mxu3 %vm111_vm0, %v377_v25 }
 0x1c9   :  { %1473 = vmatmul.msk.f32.gmra.mxu3 %vm111_vm0, %v378_v26 }
 0x1d1   :  { %1474 = vmatmul.msk.f32.gmra.mxu3 %vm111_vm0, %v379_v28 }
 0x1d9   :  { %1475 = vmatmul.msk.f32.gmra.mxu3 %vm111_vm0, %v380_v30 }
 0x1e4   :  { %v446_v35 = vpop.f32.mrf.mxu3 }
 0x1e5   :  { %v494_v36 = vadd.f32 %v446_v35, %v1973_v34 }
 0x1e7   :  { %v510_v57 = vmax.f32 %v494_v36, 0.0 }
 0x1e9   :  { %526 = vst.msk [vmem:[#allocation2] sm:$0xff] %vm111_vm0, %v510_v57 }
 0x1ec   :  { %v449_v59 = vpop.f32.mrf.mxu3 }
 0x1ed   :  { %v495_v60 = vadd.f32 %v449_v59, %v1978_v58 }
 0x1ef   :  { %v511_v61 = vmax.f32 %v495_v60, 0.0 }
 0x1f0   :  { %v550_v59 = vld [vmem:[#allocation2] sm:$0xff] }
 0x1f1   :  { %527 = vst.msk [vmem:[#allocation2 + $0x8] sm:$0xff] %vm111_vm0, %v511_v61 }
 0x1f4   :  { %v452_v33 = vpop.f32.mrf.mxu3 }
 0x1f5   :  { %v496_v63 = vadd.f32 %v452_v33, %v1983_v62 }
 0x1f7   :  { %v512_v0 = vmax.f32 %v496_v63, 0.0 }
 0x1f8   :  { %v551_v36 = vld [vmem:[#allocation2 + $0x8] sm:$0xff] }
 0x1f9   :  { %528 = vst.msk [vmem:[#allocation2 + $0x10] sm:$0xff] %vm111_vm0, %v512_v0 }
 0x1fc   :  { %v455_v31 = vpop.f32.mrf.mxu3 }
 0x1fd   :  { %v497_v2 = vadd.f32 %v455_v31, %v1988_v1 }
 0x1ff   :  { %v513_v3 = vmax.f32 %v497_v2, 0.0 }
 0x200   :  { %v552_v32 = vld [vmem:[#allocation2 + $0x10] sm:$0xff] }
 0x201   :  { %529 = vst.msk [vmem:[#allocation2 + $0x18] sm:$0xff] %vm111_vm0, %v513_v3 }
 0x204   :  { %v458_v29 = vpop.f32.mrf.mxu3 }
 0x205   :  { %v498_v5 = vadd.f32 %v458_v29, %v1993_v4 }
 0x207   :  { %v514_v6 = vmax.f32 %v498_v5, 0.0 }
 0x208   :  { %v553_v30 = vld [vmem:[#allocation2 + $0x18] sm:$0xff] }
 0x209   :  { %530 = vst.msk [vmem:[#allocation2 + $0x20] sm:$0xff] %vm111_vm0, %v514_v6 }
 0x20c   :  { %v461_v27 = vpop.f32.mrf.mxu3 }
 0x20d   :  { %v499_v8 = vadd.f32 %v461_v27, %v1998_v7 }
 0x20f   :  { %v515_v9 = vmax.f32 %v499_v8, 0.0 }
 0x210   :  { %v554_v26 = vld [vmem:[#allocation2 + $0x20] sm:$0xff] }
 0x211   :  { %531 = vst.msk [vmem:[#allocation2 + $0x28] sm:$0xff] %vm111_vm0, %v515_v9 }
 0x214   :  { %v464_v24 = vpop.f32.mrf.mxu3 }
 0x215   :  { %v500_v11 = vadd.f32 %v464_v24, %v2003_v10 }
 0x217   :  { %v516_v12 = vmax.f32 %v500_v11, 0.0 }
 0x218   :  { %v555_v25 = vld [vmem:[#allocation2 + $0x28] sm:$0xff] }
 0x219   :  { %532 = vst.msk [vmem:[#allocation2 + $0x30] sm:$0xff] %vm111_vm0, %v516_v12 }
 0x21c   :  { %v467_v22 = vpop.f32.mrf.mxu3 }
 0x21d   :  { %v501_v14 = vadd.f32 %v467_v22, %v2008_v13 }
 0x21f   :  { %v517_v15 = vmax.f32 %v501_v14, 0.0 }
 0x220   :  { %v556_v19 = vld [vmem:[#allocation2 + $0x30] sm:$0xff] }
 0x221   :  { %533 = vst.msk [vmem:[#allocation2 + $0x38] sm:$0xff] %vm111_vm0, %v517_v15 }
 0x224   :  { %v470_v16 = vpop.f32.mrf.mxu3 }
 0x225   :  { %v502_v17 = vadd.f32 %v470_v16, %v1973_v34 }
 0x227   :  { %v518_v20 = vmax.f32 %v502_v17, 0.0 }
 0x228   :  { %v557_v18 = vld [vmem:[#allocation2 + $0x38] sm:$0xff] }
 0x229   :  { %534 = vst.msk [vmem:[#allocation2 + $0x40] sm:$0xff] %vm111_vm0, %v518_v20  ;;  %590 = vmatpush.msra.mxu0 %v557_v18 }
 0x22b   :  { %591 = vmatpush.msra.mxu0 %v556_v19 }
 0x22c   :  { %v473_v23 = vpop.f32.mrf.mxu3 }
 0x22d   :  { %v503_v21 = vadd.f32 %v473_v23, %v1978_v58  ;;  %592 = vmatpush.msra.mxu0 %v555_v25 }
 0x22f   :  { %v519_v28 = vmax.f32 %v503_v21, 0.0  ;;  %593 = vmatpush.msra.mxu0 %v554_v26 }
 0x230   :  { %v639_v22 = vld [vmem:[#allocation2 + $0x40] sm:$0xff] }
 0x231   :  { %535 = vst.msk [vmem:[#allocation2 + $0x48] sm:$0xff] %vm111_vm0, %v519_v28  ;;  %594 = vmatpush.msra.mxu0 %v553_v30 }
 0x233   :  { %595 = vmatpush.msra.mxu0 %v552_v32  ;;  %v988_v32 = vld [vmem:[%s2238_s7 + $0x18] sm:$0xff] }
 0x234   :  { %v476_v35 = vpop.f32.mrf.mxu3 }
 0x235   :  { %v504_v57 = vadd.f32 %v476_v35, %v1983_v62  ;;  %596 = vmatpush.msra.mxu0 %v551_v36  ;;  %v987_v35 = vld [vmem:[%s2238_s7 + $0x10] sm:$0xff]  ;;  %v986_v36 = vld [vmem:[%s2238_s7 + $0x8] sm:$0xff] }
 0x237   :  { %v520_v60 = vmax.f32 %v504_v57, 0.0  ;;  %597 = vmatpush.msra.mxu0 %v550_v59 }
 0x238   :  { %1476 = vmatmul.msk.f32.vlgmr.msra.gmra.mxu0 %vm209_vm1, %v1845_v37 }
 0x239   :  { %536 = vst.msk [vmem:[#allocation2 + $0x50] sm:$0xff] %vm111_vm0, %v520_v60  ;;  %1049 = vmatpush.msrb.mxu0 %v988_v32  ;;  %v985_v60 = vld [vmem:[%s2238_s7] sm:$0xff]  ;;  %s2157_s7 = sld [smem:[#allocation6]] }
 0x23b   :  { %1050 = vmatpush.msrb.mxu0 %v987_v35 }
 0x23c   :  { %v479_v61 = vpop.f32.mrf.mxu3 }
 0x23d   :  { %v505_v33 = vadd.f32 %v479_v61, %v1988_v1  ;;  %1051 = vmatpush.msrb.mxu0 %v986_v36 }
 0x23f   :  { %v521_v63 = vmax.f32 %v505_v33, 0.0  ;;  %1052 = vmatpush.msrb.mxu0 %v985_v60  ;;  %p899_p0 = scmp.gt.s32.totalorder %s2157_s7, 0  ;;  %p1508_p2 = scmp.lt.s32.totalorder %s2157_s7, 63 }
 0x240   :  { %1477 = vmatmul.msk.f32.gmra.mxu0 %vm209_vm1, %v1849_v38  ;;  %v641_v12 = vld [vmem:[#allocation2 + $0x50] sm:$0xff] }
 0x241   :  { %537 = vst.msk [vmem:[#allocation2 + $0x58] sm:$0xff] %vm111_vm0, %v521_v63  ;;  %s900_s18 = scalar_select %p899_p0, %s2157_s7, 0 }
 0x243   :  { %s2245_s18 = smov (!%p1508_p2, %s900_s18), 63 }
 0x244   :  { %v482_v0 = vpop.f32.mrf.mxu3  ;;  %s903_s20 = scalar_lea.vmem [#allocation2], %s2245_s18 }
 0x245   :  { %v506_v31 = vadd.f32 %v482_v0, %v1993_v4 }
 0x247   :  { %v522_v2 = vmax.f32 %v506_v31, 0.0 }
 0x248   :  { %1478 = vmatmul.msk.f32.gmra.mxu0 %vm209_vm1, %v1853_v39  ;;  %v642_v11 = vld [vmem:[#allocation2 + $0x58] sm:$0xff] }
 0x249   :  { %538 = vst.msk [vmem:[#allocation2 + $0x60] sm:$0xff] %vm111_vm0, %v522_v2 }
 0x24c   :  { %v485_v37 = vpop.f32.mrf.mxu3 }
 0x24d   :  { %v507_v3 = vadd.f32 %v485_v37, %v1998_v7 }
 0x24f   :  { %v523_v29 = vmax.f32 %v507_v3, 0.0 }
 0x250   :  { %1479 = vmatmul.msk.f32.gmra.mxu0 %vm209_vm1, %v1857_v40 }
 0x251   :  { %539 = vst.msk [vmem:[#allocation2 + $0x68] sm:$0xff] %vm111_vm0, %v523_v29 }
 0x254   :  { %v488_v38 = vpop.f32.mrf.mxu3 }
 0x255   :  { %v508_v5 = vadd.f32 %v488_v38, %v2003_v10 }
 0x257   :  { %v524_v6 = vmax.f32 %v508_v5, 0.0 }
 0x258   :  { %1480 = vmatmul.msk.f32.gmra.mxu0 %vm209_vm1, %v1865_v42  ;;  %v644_v24 = vld [vmem:[#allocation2 + $0x68] sm:$0xff]  ;;  %v643_v42 = vld [vmem:[#allocation2 + $0x60] sm:$0xff] }
 0x259   :  { %540 = vst.msk [vmem:[#allocation2 + $0x70] sm:$0xff] %vm111_vm0, %v524_v6 }
 0x25c   :  { %v491_v39 = vpop.f32.mrf.mxu3 }
 0x25d   :  { %v509_v27 = vadd.f32 %v491_v39, %v2008_v13 }
 0x25f   :  { %v525_v8 = vmax.f32 %v509_v27, 0.0 }
 0x260   :  { %1481 = vmatmul.msk.f32.gmra.mxu0 %vm209_vm1, %v1873_v44  ;;  %v645_v9 = vld [vmem:[#allocation2 + $0x70] sm:$0xff]  ;;  %v640_v44 = vld [vmem:[#allocation2 + $0x48] sm:$0xff] }
 0x261   :  { %541 = vst.msk [vmem:[#allocation2 + $0x78] sm:$0xff] %vm111_vm0, %v525_v8 }
 0x268   :  { %1482 = vmatmul.msk.f32.gmra.mxu0 %vm209_vm1, %v1881_v46  ;;  %v646_v40 = vld [vmem:[#allocation2 + $0x78] sm:$0xff] }
 0x269   :  { %679 = vmatpush.msra.mxu1 %v646_v40 }
 0x26b   :  { %680 = vmatpush.msra.mxu1 %v645_v9 }
 0x26d   :  { %681 = vmatpush.msra.mxu1 %v644_v24 }
 0x26f   :  { %682 = vmatpush.msra.mxu1 %v643_v42 }
 0x270   :  { %1483 = vmatmul.msk.f32.gmra.mxu0 %vm209_vm1, %v1889_v48 }
 0x271   :  { %683 = vmatpush.msra.mxu1 %v642_v11 }
 0x273   :  { %684 = vmatpush.msra.mxu1 %v641_v12 }
 0x275   :  { %685 = vmatpush.msra.mxu1 %v640_v44 }
 0x277   :  { %686 = vmatpush.msra.mxu1 %v639_v22 }
 0x278   :  { %1484 = vmatmul.msk.f32.vlgmr.msra.gmra.mxu1 %vm209_vm1, %v1861_v41 }
 0x279   :  { %796 = vmatpush.msrb.mxu1 %v1912_v53 }
 0x27b   :  { %797 = vmatpush.msrb.mxu1 %v1917_v54 }
 0x27d   :  { %798 = vmatpush.msrb.mxu1 %v1924_v55 }
 0x27f   :  { %799 = vmatpush.msrb.mxu1 %v1933_v56 }
 0x280   :  { %1485 = vmatmul.msk.f32.gmra.mxu1 %vm209_vm1, %v1867_v43 }
 0x281   :  { %1550 = vmatpush.msra.mxu1 %v988_v32 }
 0x283   :  { %1551 = vmatpush.msra.mxu1 %v987_v35 }
 0x285   :  { %1552 = vmatpush.msra.mxu1 %v986_v36 }
 0x287   :  { %1553 = vmatpush.msra.mxu1 %v985_v60 }
 0x288   :  { %1486 = vmatmul.msk.f32.gmra.mxu1 %vm209_vm1, %v1875_v45 }
 0x290   :  { %1487 = vmatmul.msk.f32.gmra.mxu1 %vm209_vm1, %v1883_v47 }
 0x298   :  { %1488 = vmatmul.msk.f32.gmra.mxu1 %vm209_vm1, %v1891_v49 }
 0x2a0   :  { %1489 = vmatmul.msk.f32.gmra.mxu1 %vm209_vm1, %v1897_v50 }
 0x2a8   :  { %1490 = vmatmul.msk.f32.gmra.mxu1 %vm209_vm1, %v1901_v51 }
 0x2b0   :  { %1491 = vmatmul.msk.f32.gmra.mxu1 %vm209_vm1, %v1905_v52 }
 0x2b5   :  { %v599_v41 = vpop.f32.mrf.mxu0 }
 0x2b6   :  { %623 = vst.msk [vmem:[#allocation3] sm:$0xff] %vm111_vm0, %v599_v41 }
 0x2bd   :  { %v602_v43 = vpop.f32.mrf.mxu0  ;;  %v720_v45 = vld [vmem:[#allocation3] sm:$0xff] }
 0x2be   :  { %624 = vst.msk [vmem:[#allocation3 + $0x8] sm:$0xff] %vm111_vm0, %v602_v43  ;;  %1492 = vmatmul.msk.f32.vlgmr.msrb.gmra.mxu1 %vm111_vm0, %v720_v45 }
 0x2c5   :  { %v605_v46 = vpop.f32.mrf.mxu0  ;;  %v721_v47 = vld [vmem:[#allocation3 + $0x8] sm:$0xff] }
 0x2c6   :  { %625 = vst.msk [vmem:[#allocation3 + $0x10] sm:$0xff] %vm111_vm0, %v605_v46  ;;  %1493 = vmatmul.msk.f32.gmra.mxu1 %vm111_vm0, %v721_v47 }
 0x2cd   :  { %v608_v48 = vpop.f32.mrf.mxu0  ;;  %v722_v49 = vld [vmem:[#allocation3 + $0x10] sm:$0xff] }
 0x2ce   :  { %626 = vst.msk [vmem:[#allocation3 + $0x18] sm:$0xff] %vm111_vm0, %v608_v48  ;;  %1494 = vmatmul.msk.f32.vlgmr.msrb.gmra.mxu2 %vm111_vm0, %v722_v49 }
 0x2d5   :  { %v611_v50 = vpop.f32.mrf.mxu0  ;;  %v723_v51 = vld [vmem:[#allocation3 + $0x18] sm:$0xff] }
 0x2d6   :  { %627 = vst.msk [vmem:[#allocation3 + $0x20] sm:$0xff] %vm111_vm0, %v611_v50  ;;  %1495 = vmatmul.msk.f32.gmra.mxu2 %vm111_vm0, %v723_v51 }
 0x2dd   :  { %v614_v52 = vpop.f32.mrf.mxu0  ;;  %v724_v53 = vld [vmem:[#allocation3 + $0x20] sm:$0xff] }
 0x2de   :  { %628 = vst.msk [vmem:[#allocation3 + $0x28] sm:$0xff] %vm111_vm0, %v614_v52  ;;  %1496 = vmatmul.msk.f32.gmra.mxu2 %vm111_vm0, %v724_v53 }
 0x2e5   :  { %v617_v54 = vpop.f32.mrf.mxu0  ;;  %v725_v55 = vld [vmem:[#allocation3 + $0x28] sm:$0xff] }
 0x2e6   :  { %629 = vst.msk [vmem:[#allocation3 + $0x30] sm:$0xff] %vm111_vm0, %v617_v54  ;;  %1497 = vmatmul.msk.f32.gmra.mxu2 %vm111_vm0, %v725_v55 }
 0x2ed   :  { %v620_v56 = vpop.f32.mrf.mxu0  ;;  %v726_v14 = vld [vmem:[#allocation3 + $0x30] sm:$0xff] }
 0x2ee   :  { %630 = vst.msk [vmem:[#allocation3 + $0x38] sm:$0xff] %vm111_vm0, %v620_v56  ;;  %1498 = vmatmul.msk.f32.gmra.mxu2 %vm111_vm0, %v726_v14  ;;  %v1105_v14 = vld [vmem:[#allocation10 + $0x18] sm:$0xff] }
 0x2ef   :  { %1128 = vmatpush.msra.mxu3 %v1105_v14 }
 0x2f5   :  { %v688_v15 = vpop.f32.mrf.mxu1  ;;  %v727_v16 = vld [vmem:[#allocation3 + $0x38] sm:$0xff] }
 0x2f6   :  { %712 = vst.msk [vmem:[#allocation3 + $0x40] sm:$0xff] %vm111_vm0, %v688_v15  ;;  %1499 = vmatmul.msk.f32.gmra.mxu2 %vm111_vm0, %v727_v16 }
 0x2fd   :  { %v691_v17 = vpop.f32.mrf.mxu1  ;;  %v728_v20 = vld [vmem:[#allocation3 + $0x40] sm:$0xff] }
 0x2fe   :  { %713 = vst.msk [vmem:[#allocation3 + $0x48] sm:$0xff] %vm111_vm0, %v691_v17  ;;  %1500 = vmatmul.msk.f32.gmra.mxu2 %vm111_vm0, %v728_v20 }
 0x305   :  { %v694_v18 = vpop.f32.mrf.mxu1  ;;  %v729_v19 = vld [vmem:[#allocation3 + $0x48] sm:$0xff] }
 0x306   :  { %714 = vst.msk [vmem:[#allocation3 + $0x50] sm:$0xff] %vm111_vm0, %v694_v18  ;;  %1501 = vmatmul.msk.f32.gmra.mxu2 %vm111_vm0, %v729_v19 }
 0x30d   :  { %v697_v23 = vpop.f32.mrf.mxu1  ;;  %v730_v25 = vld [vmem:[#allocation3 + $0x50] sm:$0xff] }
 0x30e   :  { %715 = vst.msk [vmem:[#allocation3 + $0x58] sm:$0xff] %vm111_vm0, %v697_v23  ;;  %1502 = vmatmul.msk.f32.gmra.mxu2 %vm111_vm0, %v730_v25 }
 0x315   :  { %v700_v21 = vpop.f32.mrf.mxu1  ;;  %v731_v26 = vld [vmem:[#allocation3 + $0x58] sm:$0xff] }
 0x316   :  { %716 = vst.msk [vmem:[#allocation3 + $0x60] sm:$0xff] %vm111_vm0, %v700_v21  ;;  %1503 = vmatmul.msk.f32.gmra.mxu2 %vm111_vm0, %v731_v26 }
 0x31d   :  { %v703_v28 = vpop.f32.mrf.mxu1  ;;  %v732_v30 = vld [vmem:[#allocation3 + $0x60] sm:$0xff] }
 0x31e   :  { %717 = vst.msk [vmem:[#allocation3 + $0x68] sm:$0xff] %vm111_vm0, %v703_v28  ;;  %1504 = vmatmul.msk.f32.gmra.mxu2 %vm111_vm0, %v732_v30 }
 0x325   :  { %v706_v57 = vpop.f32.mrf.mxu1  ;;  %v733_v59 = vld [vmem:[#allocation3 + $0x68] sm:$0xff] }
 0x326   :  { %718 = vst.msk [vmem:[#allocation3 + $0x70] sm:$0xff] %vm111_vm0, %v706_v57  ;;  %1505 = vmatmul.msk.f32.gmra.mxu2 %vm111_vm0, %v733_v59 }
 0x32d   :  { %v709_v61 = vpop.f32.mrf.mxu1  ;;  %v734_v33 = vld [vmem:[#allocation3 + $0x70] sm:$0xff] }
 0x32e   :  { %719 = vst.msk [vmem:[#allocation3 + $0x78] sm:$0xff] %vm111_vm0, %v709_v61  ;;  %1506 = vmatmul.msk.f32.gmra.mxu2 %vm111_vm0, %v734_v33 }
 0x335   :  { %v735_v63 = vld [vmem:[#allocation3 + $0x78] sm:$0xff] }
 0x336   :  { %1507 = vmatmul.msk.f32.gmra.mxu2 %vm111_vm0, %v735_v63 }
 0x33b   :  { %v801_v0 = vpop.f32.mrf.mxu1 }
 0x33c   :  { %v849_v31 = vadd.f32 %v801_v0, %v1973_v34 }
 0x33e   :  { %v865_v2 = vmax.f32 %v849_v31, 0.0 }
 0x340   :  { %881 = vst.msk [vmem:[#allocation2] sm:$0xff] %vm111_vm0, %v865_v2 }
 0x343   :  { %v804_v37 = vpop.f32.mrf.mxu1 }
 0x344   :  { %v850_v3 = vadd.f32 %v804_v37, %v1978_v58 }
 0x346   :  { %v866_v29 = vmax.f32 %v850_v3, 0.0 }
 0x347   :  { %v918_v38 = vld [vmem:[#allocation2] sm:$0xff] }
 0x348   :  { %882 = vst.msk [vmem:[#allocation2 + $0x8] sm:$0xff] %vm111_vm0, %v866_v29  ;;  %1520 = vmatmul.msk.f32.vlgmr.msrb.gmra.mxu0 %vm111_vm0, %v918_v38  ;;  %v934_v6 = vsel %vm111_vm0, %v918_v38, 0.0 }
 0x34f   :  { %v919_v5 = vld [vmem:[#allocation2 + $0x8] sm:$0xff] }
 0x350   :  { %v935_v39 = vsel %vm111_vm0, %v919_v5, 0.0  ;;  %1521 = vmatmul.msk.f32.gmra.mxu0 %vm111_vm0, %v919_v5 }
 0x351   :  { %v936_v27 = vadd.f32 %v935_v39, %v934_v6  ;;  %v807_v8 = vpop.f32.mrf.mxu2  ;;  %v1177_v39 = vld [vmem:[#allocation12 + $0x18] sm:$0xff] }
 0x352   :  { %v851_v40 = vadd.f32 %v807_v8, %v1983_v62  ;;  %1193 = vmatpush.msrb.mxu1 %v1177_v39 }
 0x354   :  { %v867_v9 = vmax.f32 %v851_v40, 0.0  ;;  %v1175_v40 = vld [vmem:[#allocation12 + $0x8] sm:$0xff] }
 0x356   :  { %883 = vst.msk [vmem:[#allocation2 + $0x10] sm:$0xff] %vm111_vm0, %v867_v9 }
 0x359   :  { %v810_v24 = vpop.f32.mrf.mxu2 }
 0x35a   :  { %v852_v42 = vadd.f32 %v810_v24, %v1988_v1  ;;  %v1174_v24 = vld [vmem:[#allocation12] sm:$0xff] }
 0x35c   :  { %v868_v11 = vmax.f32 %v852_v42, 0.0 }
 0x35d   :  { %v920_v12 = vld [vmem:[#allocation2 + $0x10] sm:$0xff] }
 0x35e   :  { %884 = vst.msk [vmem:[#allocation2 + $0x18] sm:$0xff] %vm111_vm0, %v868_v11  ;;  %v937_v44 = vsel %vm111_vm0, %v920_v12, 0.0  ;;  %1522 = vmatmul.msk.f32.gmra.mxu0 %vm111_vm0, %v920_v12  ;;  %v1103_v11 = vld [vmem:[#allocation10 + $0x8] sm:$0xff]  ;;  %v1102_v12 = vld [vmem:[#allocation10] sm:$0xff] }
 0x35f   :  { %v938_v22 = vadd.f32 %v937_v44, %v936_v27  ;;  %v1176_v27 = vld [vmem:[#allocation12 + $0x10] sm:$0xff] }
 0x360   :  { %1194 = vmatpush.msrb.mxu1 %v1176_v27 }
 0x361   :  { %v813_v41 = vpop.f32.mrf.mxu2 }
 0x362   :  { %v853_v43 = vadd.f32 %v813_v41, %v1993_v4  ;;  %1195 = vmatpush.msrb.mxu1 %v1175_v40 }
 0x364   :  { %v869_v45 = vmax.f32 %v853_v43, 0.0  ;;  %1196 = vmatpush.msrb.mxu1 %v1174_v24 }
 0x365   :  { %v921_v46 = vld [vmem:[#allocation2 + $0x18] sm:$0xff] }
 0x366   :  { %885 = vst.msk [vmem:[#allocation2 + $0x20] sm:$0xff] %vm111_vm0, %v869_v45  ;;  %v939_v47 = vsel %vm111_vm0, %v921_v46, 0.0  ;;  %1523 = vmatmul.msk.f32.gmra.mxu0 %vm111_vm0, %v921_v46 }
 0x367   :  { %v940_v48 = vadd.f32 %v939_v47, %v938_v22 }
 0x369   :  { %v816_v49 = vpop.f32.mrf.mxu2 }
 0x36a   :  { %v854_v50 = vadd.f32 %v816_v49, %v1998_v7 }
 0x36c   :  { %v870_v51 = vmax.f32 %v854_v50, 0.0 }
 0x36d   :  { %v922_v52 = vld [vmem:[#allocation2 + $0x20] sm:$0xff] }
 0x36e   :  { %886 = vst.msk [vmem:[#allocation2 + $0x28] sm:$0xff] %vm111_vm0, %v870_v51  ;;  %v941_v53 = vsel %vm111_vm0, %v922_v52, 0.0  ;;  %1524 = vmatmul.msk.f32.gmra.mxu0 %vm111_vm0, %v922_v52 }
 0x36f   :  { %v942_v54 = vadd.f32 %v941_v53, %v940_v48 }
 0x371   :  { %v819_v55 = vpop.f32.mrf.mxu2 }
 0x372   :  { %v855_v56 = vadd.f32 %v819_v55, %v2003_v10 }
 0x374   :  { %v871_v15 = vmax.f32 %v855_v56, 0.0 }
 0x375   :  { %v923_v16 = vld [vmem:[#allocation2 + $0x28] sm:$0xff] }
 0x376   :  { %887 = vst.msk [vmem:[#allocation2 + $0x30] sm:$0xff] %vm111_vm0, %v871_v15  ;;  %v943_v17 = vsel %vm111_vm0, %v923_v16, 0.0  ;;  %1525 = vmatmul.msk.f32.gmra.mxu0 %vm111_vm0, %v923_v16 }
 0x377   :  { %v944_v20 = vadd.f32 %v943_v17, %v942_v54 }
 0x379   :  { %v822_v18 = vpop.f32.mrf.mxu2 }
 0x37a   :  { %v856_v19 = vadd.f32 %v822_v18, %v2008_v13 }
 0x37c   :  { %v872_v23 = vmax.f32 %v856_v19, 0.0 }
 0x37d   :  { %v924_v25 = vld [vmem:[#allocation2 + $0x30] sm:$0xff] }
 0x37e   :  { %888 = vst.msk [vmem:[#allocation2 + $0x38] sm:$0xff] %vm111_vm0, %v872_v23  ;;  %v945_v21 = vsel %vm111_vm0, %v924_v25, 0.0  ;;  %1526 = vmatmul.msk.f32.gmra.mxu0 %vm111_vm0, %v924_v25 }
 0x37f   :  { %v946_v26 = vadd.f32 %v945_v21, %v944_v20 }
 0x381   :  { %v825_v28 = vpop.f32.mrf.mxu2 }
 0x382   :  { %v857_v30 = vadd.f32 %v825_v28, %v1973_v34  ;;  %v1104_v34 = vld [vmem:[#allocation10 + $0x10] sm:$0xff] }
 0x383   :  { %1129 = vmatpush.msra.mxu3 %v1104_v34 }
 0x384   :  { %v873_v32 = vmax.f32 %v857_v30, 0.0 }
 0x385   :  { %v925_v35 = vld [vmem:[#allocation2 + $0x38] sm:$0xff]  ;;  %1130 = vmatpush.msra.mxu3 %v1103_v11  ;;  %v1569_v11 = vld [vmem:[%s2240_s9] ss:$0 sm:$0xff]  ;;  %s1696_s9 = smov [#allocation13]  }
 0x386   :  { %889 = vst.msk [vmem:[#allocation2 + $0x40] sm:$0xff] %vm111_vm0, %v873_v32  ;;  %v947_v36 = vsel %vm111_vm0, %v925_v35, 0.0  ;;  %1527 = vmatmul.msk.f32.gmra.mxu0 %vm111_vm0, %v925_v35  ;;  %s1420_s23 = sshll.u32 %s1696_s9, 4  ;;  %s1421_s23 = int_to_ptr.vmem [resolvable:$true] %s1420_s23 }
 0x387   :  { %v2142_v57 = vadd.f32 %v947_v36, %v946_v26  ;;  %1131 = vmatpush.msra.mxu3 %v1102_v12 }
 0x389   :  { %v828_v59 = vpop.f32.mrf.mxu2  ;;  %v949_v51 = vrot.slane %v2142_v57, 4 }
 0x38a   :  { %v858_v60 = vadd.f32 %v828_v59, %v1978_v58  ;;  %v1568_v59 = vld [vmem:[%s2242_s11] ss:$0 sm:$0xff] }
 0x38b   :  { %v950_v14 = vadd.f32 %v949_v51, %v2142_v57 }
 0x38c   :  { %v874_v61 = vmax.f32 %v858_v60, 0.0 }
 0x38d   :  { %v926_v33 = vld [vmem:[#allocation2 + $0x40] sm:$0xff]  ;;  %v951_v18 = vrot.slane %v950_v14, 2 }
 0x38e   :  { %890 = vst.msk [vmem:[#allocation2 + $0x48] sm:$0xff] %vm111_vm0, %v874_v61  ;;  %1528 = vmatmul.msk.f32.gmra.mxu0 %vm111_vm0, %v926_v33  ;;  %v955_v45 = vsel %vm111_vm0, %v926_v33, 0.0 }
 0x38f   :  { %v952_v32 = vadd.f32 %v951_v18, %v950_v14 }
 0x391   :  { %v831_v63 = vpop.f32.mrf.mxu2  ;;  %v953_v60 = vrot.slane %v952_v32, 1 }
 0x392   :  { %v859_v0 = vadd.f32 %v831_v63, %v1983_v62 }
 0x394   :  { %v875_v31 = vmax.f32 %v859_v0, 0.0 }
 0x395   :  { %v927_v2 = vld [vmem:[#allocation2 + $0x48] sm:$0xff] }
 0x396   :  { %891 = vst.msk [vmem:[#allocation2 + $0x50] sm:$0xff] %vm111_vm0, %v875_v31  ;;  %1529 = vmatmul.msk.f32.gmra.mxu0 %vm111_vm0, %v927_v2  ;;  %v956_v41 = vsel %vm111_vm0, %v927_v2, 0.0  ;;  %v954_v31 = vadd.f32 %v953_v60, %v952_v32 }
 0x397   :  { %v957_v48 = vadd.f32 %v956_v41, %v955_v45 }
 0x399   :  { %v834_v37 = vpop.f32.mrf.mxu2 }
 0x39a   :  { %v860_v58 = vadd.f32 %v834_v37, %v1988_v1 }
 0x39c   :  { %v876_v3 = vmax.f32 %v860_v58, 0.0 }
 0x39d   :  { %v928_v29 = vld [vmem:[#allocation2 + $0x50] sm:$0xff] }
 0x39e   :  { %892 = vst.msk [vmem:[#allocation2 + $0x58] sm:$0xff] %vm111_vm0, %v876_v3  ;;  %1530 = vmatmul.msk.f32.gmra.mxu0 %vm111_vm0, %v928_v29  ;;  %v958_v46 = vsel %vm111_vm0, %v928_v29, 0.0 }
 0x39f   :  { %v959_v52 = vadd.f32 %v958_v46, %v957_v48 }
 0x3a1   :  { %v837_v38 = vpop.f32.mrf.mxu2 }
 0x3a2   :  { %v861_v5 = vadd.f32 %v837_v38, %v1993_v4 }
 0x3a4   :  { %v877_v6 = vmax.f32 %v861_v5, 0.0 }
 0x3a5   :  { %v929_v62 = vld [vmem:[#allocation2 + $0x58] sm:$0xff] }
 0x3a6   :  { %893 = vst.msk [vmem:[#allocation2 + $0x60] sm:$0xff] %vm111_vm0, %v877_v6  ;;  %1531 = vmatmul.msk.f32.gmra.mxu0 %vm111_vm0, %v929_v62  ;;  %v960_v49 = vsel %vm111_vm0, %v929_v62, 0.0 }
 0x3a7   :  { %v961_v55 = vadd.f32 %v960_v49, %v959_v52 }
 0x3a9   :  { %v840_v8 = vpop.f32.mrf.mxu2 }
 0x3aa   :  { %v862_v1 = vadd.f32 %v840_v8, %v1998_v7 }
 0x3ac   :  { %v878_v9 = vmax.f32 %v862_v1, 0.0 }
 0x3ad   :  { %v930_v4 = vld [vmem:[#allocation2 + $0x60] sm:$0xff] }
 0x3ae   :  { %894 = vst.msk [vmem:[#allocation2 + $0x68] sm:$0xff] %vm111_vm0, %v878_v9  ;;  %1532 = vmatmul.msk.f32.gmra.mxu0 %vm111_vm0, %v930_v4  ;;  %v962_v54 = vsel %vm111_vm0, %v930_v4, 0.0 }
 0x3af   :  { %v963_v15 = vadd.f32 %v962_v54, %v961_v55 }
 0x3b1   :  { %v843_v42 = vpop.f32.mrf.mxu2 }
 0x3b2   :  { %v863_v7 = vadd.f32 %v843_v42, %v2003_v10  ;;  %v1694_v10 = vmov 64.0  }
 0x3b3   :  { %1570 = vrcp.f32 %v1694_v10 }
 0x3b4   :  { %v879_v44 = vmax.f32 %v863_v7, 0.0 }
 0x3b5   :  { %v931_v22 = vld [vmem:[#allocation2 + $0x68] sm:$0xff] }
 0x3b6   :  { %895 = vst.msk [vmem:[#allocation2 + $0x70] sm:$0xff] %vm111_vm0, %v879_v44  ;;  %1533 = vmatmul.msk.f32.gmra.mxu0 %vm111_vm0, %v931_v22  ;;  %v964_v56 = vsel %vm111_vm0, %v931_v22, 0.0 }
 0x3b7   :  { %v965_v20 = vadd.f32 %v964_v56, %v963_v15 }
 0x3b9   :  { %v846_v43 = vpop.f32.mrf.mxu2 }
 0x3ba   :  { %v864_v47 = vadd.f32 %v846_v43, %v2008_v13  ;;  %v1571_v13 = vpop.eup %1570 }
 0x3bb   :  { %v977_v17 = vmul.f32 64.0, %v1571_v13  ;;  %vm981_vm4 = vweird.f32 %v1571_v13 }
 0x3bc   :  { %v880_v50 = vmax.f32 %v864_v47, 0.0 }
 0x3bd   :  { %v932_v53 = vld [vmem:[#allocation2 + $0x70] sm:$0xff]  ;;  %v978_v28 = vsub.f32 1.0, %v977_v17 }
 0x3be   :  { %896 = vst.msk [vmem:[#allocation2 + $0x78] sm:$0xff] %vm111_vm0, %v880_v50  ;;  %1534 = vmatmul.msk.f32.vlgmr.msra.gmra.mxu1 %vm111_vm0, %v932_v53  ;;  %v966_v16 = vsel %vm111_vm0, %v932_v53, 0.0 }
 0x3bf   :  { %v967_v23 = vadd.f32 %v966_v16, %v965_v20  ;;  %v979_v36 = vmul.f32 %v1571_v13, %v978_v28 }
 0x3c1   :  { %v980_v34 = vadd.f32 %v1571_v13, %v979_v36 }
 0x3c3   :  { %v982_v58 = vsel %vm981_vm4, %v1571_v13, %v980_v34 }
 0x3c4   :  { %v983_v29 = vmul.f32 %v982_v58, %v954_v31 }
 0x3c5   :  { %v933_v19 = vld [vmem:[#allocation2 + $0x78] sm:$0xff]  ;;  %v904_v25 = vld [vmem:[%s903_s20] sm:$0x1]  ;;  %v1054_v6 = vpop.f32.mrf.mxu0 }
 0x3c6   :  { %v1519_v21 = vld [vmem:[%s1434_s8 + $0x40] sm:$0x1]  ;;  %v968_v26 = vsel %vm111_vm0, %v933_v19, 0.0  ;;  %1535 = vmatmul.msk.f32.gmra.mxu1 %vm111_vm0, %v933_v19  ;;  %906 = vst.msk [vmem:[#allocation4] sm:$0x1] %vm905_vm2, %v904_v25 }
 0x3c7   :  { %v969_v30 = vadd.f32 %v968_v26, %v967_v23  ;;  %916 = vst.msk [vmem:[#allocation4 + $0x1] sm:$0x1] %vm905_vm2, %v1519_v21 }
 0x3c9   :  { %v970_v35 = vrot.slane %v969_v30, 4 }
 0x3cb   :  { %v971_v57 = vadd.f32 %v970_v35, %v969_v30 }
 0x3cd   :  { %v972_v61 = vrot.slane %v971_v57, 2  ;;  %v1057_v62 = vpop.f32.mrf.mxu0 }
 0x3ce   :  { %v917_v33 = vld [vmem:[#allocation4] sm:$0x3] }
 0x3cf   :  { %v973_v63 = vadd.f32 %v972_v61, %v971_v57  ;;  %1537 = vmatmul.msk.f32.vlgmr.msrb.gmra.mxu1 %vm111_vm0, %v917_v33  ;;  %v1205_v0 = vmul.f32 %v1568_v59, %v917_v33 }
 0x3d1   :  { %v974_v2 = vrot.slane %v973_v63, 1  ;;  %v1207_v37 = vsel %vm1206_vm3, %v1205_v0, 0.0 }
 0x3d2   :  { %1208 = vadd.xlane.f32.xlu0 %v1207_v37 }
 0x3d3   :  { %v975_v3 = vadd.f32 %v974_v2, %v973_v63 }
 0x3d5   :  { %v984_v38 = vmul.f32 %v982_v58, %v975_v3 }
 0x3d7   :  { %v1113_v5 = vsel %vm1112_vm5, %v984_v38, %v983_v29 }
 0x3d8   :  { %1536 = vmatmul.msk.f32.vlgmr.msra.gmra.mxu3 %vm111_vm0, %v1113_v5 }
 0x3db   :  { %v1060_v39 = vpop.f32.mrf.mxu0 }
 0x3e3   :  { %v1063_v27 = vpop.f32.mrf.mxu0 }
 0x3eb   :  { %v1066_v8 = vpop.f32.mrf.mxu0 }
 0x3f3   :  { %v1069_v1 = vpop.f32.mrf.mxu0 }
 0x3fb   :  { %v1072_v40 = vpop.f32.mrf.mxu0 }
 0x403   :  { %v1075_v9 = vpop.f32.mrf.mxu0 }
 0x40b   :  { %v1078_v24 = vpop.f32.mrf.mxu0 }
 0x413   :  { %v1081_v42 = vpop.f32.mrf.mxu0 }
 0x41b   :  { %v1084_v12 = vpop.f32.mrf.mxu0 }
 0x423   :  { %v1087_v14 = vpop.f32.mrf.mxu0 }
 0x42b   :  { %v1090_v61 = vpop.f32.mrf.mxu0 }
 0x43b   :  { %v2196_v4 = vpop.f32.mrf.mxu1 }
 0x443   :  { %v2198_v7 = vpop.f32.mrf.mxu1 }
 0x44c   :  { %v1198_v41 = vpop.f32.mrf.mxu1 }
 0x44d   :  { %v1212_v47 = vperm.slane %v1198_v41, 0  ;;  %v1211_v35 = vrot.slane %v1198_v41, 1 }
 0x44f   :  { %v1213_v63 = vperm.slane %v1211_v35, 0 }
 0x45b   :  { %v1133_v44 = vpop.f32.mrf.mxu3 }
 0x45c   :  { %v1134_v22 = vadd.f32 %v1569_v11, %v1133_v44 }
 0x45e   :  { %v1138_v43 = vperm.slane %v1134_v22, 0  ;;  %v1137_v53 = vrot.slane %v1134_v22, 1 }
 0x460   :  { %v1145_v10 = vadd.f32 %v1138_v43, %v1063_v27  ;;  %v1143_v45 = vadd.f32 %v1138_v43, %v1057_v62  ;;  %v1142_v46 = vadd.f32 %v1138_v43, %v1054_v6  ;;  %v1146_v48 = vadd.f32 %v1138_v43, %v1066_v8  ;;  %v1093_v27 = vpop.f32.mrf.mxu0 }
 0x461   :  { %v1144_v52 = vadd.f32 %v1138_v43, %v1060_v39  ;;  %v1147_v54 = vadd.f32 %v1138_v43, %v1069_v1  ;;  %v1139_v19 = vperm.slane %v1137_v53, 0  ;;  %v1149_v26 = vadd.f32 %v1138_v43, %v1075_v9 }
 0x462   :  { %v1161_v49 = vmax.f32 %v1145_v10, 0.0  ;;  %v1159_v50 = vmax.f32 %v1143_v45, 0.0  ;;  %v1158_v51 = vmax.f32 %v1142_v46, 0.0  ;;  %v1162_v15 = vmax.f32 %v1146_v48, 0.0 }
 0x463   :  { %v1160_v18 = vmax.f32 %v1144_v52, 0.0  ;;  %v1163_v23 = vmax.f32 %v1147_v54, 0.0  ;;  %v1148_v28 = vadd.f32 %v1138_v43, %v1072_v40  ;;  %v1150_v32 = vadd.f32 %v1139_v19, %v1078_v24 }
 0x464   :  { %v1219_v13 = vmul.f32 %v1212_v47, %v1161_v49  ;;  %v1217_v55 = vmul.f32 %v1212_v47, %v1159_v50  ;;  %v1216_v56 = vmul.f32 %v1212_v47, %v1158_v51  ;;  %v1220_v25 = vmul.f32 %v1212_v47, %v1162_v15 }
 0x465   :  { %v1218_v21 = vmul.f32 %v1212_v47, %v1160_v18  ;;  %v1221_v30 = vmul.f32 %v1212_v47, %v1163_v23  ;;  %v1165_v59 = vmax.f32 %v1149_v26, 0.0  ;;  %v1164_v60 = vmax.f32 %v1148_v28, 0.0 }
 0x466   :  { %v1241_v16 = vsel %vm111_vm0, %v1219_v13, 0.0  ;;  %v1235_v17 = vsel %vm111_vm0, %v1217_v55, 0.0  ;;  %v1232_v20 = vsel %vm111_vm0, %v1216_v56, 0.0  ;;  %v1244_v36 = vsel %vm111_vm0, %v1220_v25, 0.0 }
 0x467   :  { %1242 = vadd.xlane.f32.xlu2 %v1241_v16  ;;  %1236 = vadd.xlane.f32.xlu1 %v1235_v17  ;;  %v1238_v57 = vsel %vm111_vm0, %v1218_v21, 0.0  ;;  %v1247_v33 = vsel %vm111_vm0, %v1221_v30, 0.0  ;;  %v1166_v34 = vmax.f32 %v1150_v32, 0.0  ;;  %v1223_v0 = vmul.f32 %v1212_v47, %v1165_v59 }
 0x468   :  { %1233 = vadd.xlane.f32.xlu0 %v1232_v20  ;;  %v1222_v31 = vmul.f32 %v1212_v47, %v1164_v60  ;;  %v1152_v2 = vadd.f32 %v1139_v19, %v1084_v12  ;;  %v1151_v37 = vadd.f32 %v1139_v19, %v1081_v42  ;;  %v1153_v3 = vadd.f32 %v1139_v19, %v1087_v14 }
 0x469   :  { %v1224_v58 = vmul.f32 %v1213_v63, %v1166_v34  ;;  %v1253_v29 = vsel %vm111_vm0, %v1223_v0, 0.0  ;;  %v1155_v40 = vadd.f32 %v1139_v19, %v1093_v27  ;;  %v1154_v9 = vadd.f32 %v1139_v19, %v1090_v61 }
 0x46a   :  { %v1250_v38 = vsel %vm111_vm0, %v1222_v31, 0.0  ;;  %v1168_v5 = vmax.f32 %v1152_v2, 0.0  ;;  %v1167_v6 = vmax.f32 %v1151_v37, 0.0  ;;  %v1169_v39 = vmax.f32 %v1153_v3, 0.0 }
 0x46b   :  { %v1256_v62 = vsel %vm111_vm0, %v1224_v58, 0.0  ;;  %v1156_v42 = vadd.f32 %v1139_v19, %v2196_v4  ;;  %v1171_v44 = vmax.f32 %v1155_v40, 0.0  ;;  %v1170_v22 = vmax.f32 %v1154_v9, 0.0 }
 0x46c   :  { %v1226_v8 = vmul.f32 %v1213_v63, %v1168_v5  ;;  %v1225_v1 = vmul.f32 %v1213_v63, %v1167_v6  ;;  %v1227_v24 = vmul.f32 %v1213_v63, %v1169_v39  ;;  %v1157_v46 = vadd.f32 %v1139_v19, %v2198_v7  ;;  %v1209_v7 = vpop.xlane.xlu0 %1208 }
 0x46d   :  { %v1172_v43 = vmax.f32 %v1156_v42, 0.0  ;;  %v1229_v10 = vmul.f32 %v1213_v63, %v1171_v44  ;;  %v1228_v45 = vmul.f32 %v1213_v63, %v1170_v22  ;;  %v1695_v53 = vmov 0  }
 0x46e   :  { %v1262_v11 = vsel %vm111_vm0, %v1226_v8, 0.0  ;;  %v1259_v12 = vsel %vm111_vm0, %v1225_v1, 0.0  ;;  %v1265_v41 = vsel %vm111_vm0, %v1227_v24, 0.0  ;;  %v1173_v49 = vmax.f32 %v1157_v46, 0.0  ;;  %1564 = vset.pattern.permute.xlu0 %v1695_v53  ;;  %1563 = vset.pattern.permute.xlu2 %v1695_v53 }
 0x46f   :  { %1245 = vadd.xlane.f32.xlu2 %v1244_v36  ;;  %1239 = vadd.xlane.f32.xlu1 %v1238_v57  ;;  %v1230_v47 = vmul.f32 %v1213_v63, %v1172_v43  ;;  %v1271_v48 = vsel %vm111_vm0, %v1229_v10, 0.0  ;;  %v1268_v4 = vsel %vm111_vm0, %v1228_v45, 0.0  ;;  %v1281_v54 = vperm.slane %v1209_v7, 0 }
 0x470   :  { %1248 = vadd.xlane.f32.xlu0 %v1247_v33  ;;  %v1231_v51 = vmul.f32 %v1213_v63, %v1173_v49  ;;  %1565 = vset.pattern.permute.xlu1 %v1695_v53  ;;  %v1282_v23 = vperm.slane %v1209_v7, 1  ;;  %v1365_v1 = vlaneseq }
 0x471   :  { %v1274_v50 = vsel %vm111_vm0, %v1230_v47, 0.0 }
 0x472   :  { %v1277_v52 = vsel %vm111_vm0, %v1231_v51, 0.0  ;;  %v1366_v24 = vand.u32 127, %v1365_v1 }
 0x474   :  { %v1376_v45 = vadd.s32 4294967272, %v1366_v24  ;;  %v1384_v49 = vadd.s32 4294967256, %v1366_v24  ;;  %v1380_v51 = vadd.s32 4294967264, %v1366_v24 }
 0x477   :  { %1254 = vadd.xlane.f32.xlu2 %v1253_v29  ;;  %1251 = vadd.xlane.f32.xlu1 %v1250_v38 }
 0x478   :  { %1257 = vadd.xlane.f32.xlu0 %v1256_v62 }
 0x47f   :  { %1263 = vadd.xlane.f32.xlu2 %v1262_v11  ;;  %1260 = vadd.xlane.f32.xlu1 %v1259_v12  ;;  %v1368_v11 = vadd.s32 4294967288, %v1366_v24  ;;  %v1372_v12 = vadd.s32 4294967280, %v1366_v24 }
 0x480   :  { %1266 = vadd.xlane.f32.xlu0 %v1265_v41 }
 0x487   :  { %1272 = vadd.xlane.f32.xlu2 %v1271_v48  ;;  %1269 = vadd.xlane.f32.xlu1 %v1268_v4 }
 0x488   :  { %1275 = vadd.xlane.f32.xlu0 %v1274_v50 }
 0x48f   :  { %1278 = vadd.xlane.f32.xlu1 %v1277_v52 }
 0x4da   :  { %v1243_v13 = vpop.xlane.xlu2 %1242  ;;  %v1237_v55 = vpop.xlane.xlu1 %1236 }
 0x4db   :  { %v1286_v56 = vadd.f32 %v1281_v54, %v1237_v55  ;;  %v1234_v14 = vpop.xlane.xlu0 %1233  ;;  %v1288_v19 = vadd.f32 %v1281_v54, %v1243_v13 }
 0x4dc   :  { %v1285_v15 = vadd.f32 %v1281_v54, %v1234_v14 }
 0x4dd   :  { %1321 = vperm.xlu0 %1564, %v1286_v56   ;;  %v1392_v56 = vadd.s32 4294967240, %v1366_v24 }
 0x4de   :  { %1318 = vperm.xlu2 %1563, %v1285_v15  }
 0x4e2   :  { %v1246_v16 = vpop.xlane.xlu2 %1245  ;;  %v1240_v17 = vpop.xlane.xlu1 %1239 }
 0x4e3   :  { %v1287_v20 = vadd.f32 %v1281_v54, %v1240_v17  ;;  %v1249_v18 = vpop.xlane.xlu0 %1248  ;;  %v1289_v28 = vadd.f32 %v1281_v54, %v1246_v16  ;;  %v1388_v16 = vadd.s32 4294967248, %v1366_v24 }
 0x4e4   :  { %v1290_v25 = vadd.f32 %v1281_v54, %v1249_v18 }
 0x4e5   :  { %1324 = vperm.xlu1 %1565, %v1287_v20  }
 0x4e6   :  { %1327 = vperm.xlu2 %1563, %v1288_v19  }
 0x4ea   :  { %v1252_v21 = vpop.xlane.xlu1 %1251  ;;  %v1255_v30 = vpop.xlane.xlu2 %1254 }
 0x4eb   :  { %v1258_v26 = vpop.xlane.xlu0 %1257  ;;  %v1292_v35 = vadd.f32 %v1281_v54, %v1255_v30  ;;  %v1291_v57 = vadd.f32 %v1281_v54, %v1252_v21 }
 0x4ec   :  { %v1293_v32 = vadd.f32 %v1282_v23, %v1258_v26 }
 0x4ed   :  { %1333 = vperm.xlu1 %1565, %v1290_v25  }
 0x4ee   :  { %1330 = vperm.xlu2 %1563, %v1289_v28   ;;  %1342 = vperm.xlu0 %1564, %v1293_v32  }
 0x4f2   :  { %v1261_v60 = vpop.xlane.xlu1 %1260  ;;  %v1264_v61 = vpop.xlane.xlu2 %1263 }
 0x4f3   :  { %v1267_v36 = vpop.xlane.xlu0 %1266  ;;  %v1295_v33 = vadd.f32 %v1282_v23, %v1264_v61  ;;  %v1294_v63 = vadd.f32 %v1282_v23, %v1261_v60 }
 0x4f4   :  { %v1296_v59 = vadd.f32 %v1282_v23, %v1267_v36 }
 0x4f5   :  { %1339 = vperm.xlu1 %1565, %v1292_v35  }
 0x4f6   :  { %1336 = vperm.xlu2 %1563, %v1291_v57   ;;  %1351 = vperm.xlu0 %1564, %v1296_v59  }
 0x4fa   :  { %v1270_v31 = vpop.xlane.xlu1 %1269  ;;  %v1273_v2 = vpop.xlane.xlu2 %1272 }
 0x4fb   :  { %v1276_v34 = vpop.xlane.xlu0 %1275  ;;  %v1298_v37 = vadd.f32 %v1282_v23, %v1273_v2  ;;  %v1297_v58 = vadd.f32 %v1282_v23, %v1270_v31 }
 0x4fc   :  { %v1299_v0 = vadd.f32 %v1282_v23, %v1276_v34 }
 0x4fd   :  { %1348 = vperm.xlu1 %1565, %v1295_v33  }
 0x4fe   :  { %1345 = vperm.xlu2 %1563, %v1294_v63   ;;  %1360 = vperm.xlu0 %1564, %v1299_v0  }
 0x502   :  { %v1279_v3 = vpop.xlane.xlu1 %1278 }
 0x503   :  { %v1300_v29 = vadd.f32 %v1282_v23, %v1279_v3 }
 0x505   :  { %1357 = vperm.xlu1 %1565, %v1298_v37  }
 0x506   :  { %1354 = vperm.xlu2 %1563, %v1297_v58  }
 0x50e   :  { %1363 = vperm.xlu2 %1563, %v1300_v29  }
 0x538   :  { %v1319_v38 = vpop.permute.xlu2 %1318 }
 0x539   :  { %v1367_v10 = vperm.slane %v1319_v38, %v1366_v24 }
 0x540   :  { %v1328_v5 = vpop.permute.xlu2 %1327 }
 0x541   :  { %v1377_v53 = vperm.slane %v1328_v5, %v1376_v45 }
 0x548   :  { %v1331_v6 = vpop.permute.xlu2 %1330 }
 0x549   :  { %v1381_v15 = vperm.slane %v1331_v6, %v1380_v51 }
 0x54f   :  { %v1322_v27 = vpop.permute.xlu0 %1321 }
 0x550   :  { %v1337_v39 = vpop.permute.xlu2 %1336  ;;  %v1369_v44 = vperm.slane %v1322_v27, %v1368_v11 }
 0x551   :  { %v1389_v30 = vperm.slane %v1337_v39, %v1388_v16 }
 0x552   :  { %v1371_v48 = vsel %vm1370_vm6, %v1369_v44, %v1367_v10 }
 0x557   :  { %v1325_v62 = vpop.permute.xlu1 %1324 }
 0x558   :  { %v1346_v9 = vpop.permute.xlu2 %1345  ;;  %v1373_v41 = vperm.slane %v1325_v62, %v1372_v12 }
 0x559   :  { %v1397_v4 = vperm.slane %v1346_v9, %v1368_v11 }
 0x55a   :  { %v1375_v52 = vsel %vm1374_vm7, %v1373_v41, %v1371_v48 }
 0x55b   :  { %v1379_v13 = vsel %vm1378_vm8, %v1377_v53, %v1375_v52 }
 0x55c   :  { %v1383_v19 = vsel %vm1382_vm9, %v1381_v15, %v1379_v13 }
 0x55f   :  { %v1334_v8 = vpop.permute.xlu1 %1333 }
 0x560   :  { %v1343_v40 = vpop.permute.xlu0 %1342  ;;  %v1355_v43 = vpop.permute.xlu2 %1354  ;;  %v1385_v55 = vperm.slane %v1334_v8, %v1384_v49 }
 0x561   :  { %v1396_v46 = vperm.slane %v1343_v40, %v1366_v24  ;;  %v1403_v18 = vperm.slane %v1355_v43, %v1380_v51 }
 0x562   :  { %v1387_v21 = vsel %vm1386_vm10, %v1385_v55, %v1383_v19 }
 0x563   :  { %v1398_v7 = vsel %vm1370_vm6, %v1397_v4, %v1396_v46  ;;  %v1391_v59 = vsel %vm1390_vm11, %v1389_v30, %v1387_v21 }
 0x567   :  { %v1340_v42 = vpop.permute.xlu1 %1339 }
 0x568   :  { %v1352_v22 = vpop.permute.xlu0 %1351  ;;  %v1364_v23 = vpop.permute.xlu2 %1363  ;;  %v1393_v26 = vperm.slane %v1340_v42, %v1392_v56 }
 0x569   :  { %v1401_v14 = vperm.slane %v1352_v22, %v1376_v45  ;;  %v1409_v36 = vperm.slane %v1364_v23, %v1392_v56 }
 0x56a   :  { %v1395_v61 = vsel %vm1394_vm12, %v1393_v26, %v1391_v59 }
 0x56f   :  { %v1349_v47 = vpop.permute.xlu1 %1348 }
 0x570   :  { %v1399_v50 = vperm.slane %v1349_v47, %v1372_v12  ;;  %v1361_v20 = vpop.permute.xlu0 %1360 }
 0x571   :  { %v1407_v32 = vperm.slane %v1361_v20, %v1388_v16 }
 0x572   :  { %v1400_v54 = vsel %vm1374_vm7, %v1399_v50, %v1398_v7 }
 0x573   :  { %v1402_v17 = vsel %vm1378_vm8, %v1401_v14, %v1400_v54 }
 0x574   :  { %v1404_v35 = vsel %vm1382_vm9, %v1403_v18, %v1402_v17 }
 0x577   :  { %v1358_v25 = vpop.permute.xlu1 %1357 }
 0x578   :  { %v1405_v28 = vperm.slane %v1358_v25, %v1384_v49 }
 0x57a   :  { %v1406_v57 = vsel %vm1386_vm10, %v1405_v28, %v1404_v35 }
 0x57b   :  { %v1408_v60 = vsel %vm1390_vm11, %v1407_v32, %v1406_v57 }
 0x57c   :  { %v1410_v33 = vsel %vm1394_vm12, %v1409_v36, %v1408_v60 }
 0x57d   :  { %v1411_v34 = vsel %vm1112_vm5, %v1410_v33, %v1395_v61 }
 0x57e   :  { %1414 = vst.msk [vmem:[#allocation13] sm:$0x3] %vm1413_vm13, %v1411_v34 }
 0x57f   :  { %1425 = dma.vmem_to_hbm [thread:$0]  %s1421_s23, 32, %s1423_s24, [#allocation9]  }
 0x580   :  { %1686 = dma.done.wait [#allocation9], 32  }
 0x581   :  { %1687 = vsyncadd [#allocation9], 4294967264 }
 0x582   :  { %1430 = vsyncpa [#allocation8], 1 }
 0x583   :  { %1431 = vsyncpa [#allocation11], 1 }
 0x584   :  { %1432 = vsyncpa [#allocation9], 1 }

</bundles_post_ra>
